<compile_context>
chip_gen: v7x
topology: tpu7x:2x2x1
jax: 0.10.0
libtpu: 0.0.40
codegen_flags: <defaults>
</compile_context>

<pallas_src>
import jax
import jax.numpy as jnp
from jax import lax
from jax.experimental import pallas as pl
from jax.experimental.pallas import tpu as pltpu


FEAT = 512          # efm output width (fixed by the PyTorch module)
RAM_HIDDEN = 128    # ram hidden width (nn.Linear(2, 128))
OUT_LANES = 128     # packed, lane-dense output slab width
TK_MAX = 4096       # max K tile over the flattened input features

# Column layout shared by the fused-heads matmul and the packed output slab.
PAM_COLS = (0, 5)   # p_score  (sigmoid of pam)
DC_COLS = (5, 7)    # coherence (softmax of data_classifier)
EAM_COLS = (7, 9)   # e_score  (tanh of eam)
XEP_COLS = (9, 14)  # x_ep     (ram output)

# Row layout of the packed "small residents" array (8, 512) f32.
ROW_B_EFM = 0       # lanes 0:512
ROW_B_HEADS = 1     # lanes 0:128 (fused pam|dc|eam bias)
ROW_B_R1 = 2        # lanes 0:128
ROW_B_R2 = 3        # lanes 0:128 (ram[2] bias, placed at XEP_COLS)
ROW_W_R1_0 = 4      # lanes 0:128 (ram[0] weight, input 0)
ROW_W_R1_1 = 5      # lanes 0:128 (ram[0] weight, input 1)

_NEG_LARGE = -1e30


def _round_up(x, m):
    return (x + m - 1) // m * m


def _choose_tiling(d_in):
    """Pick (tk, d_in_padded, num_k_steps) so small d_in is not padded to TK_MAX."""
    kb = max(1, -(-d_in // TK_MAX))
    tk = _round_up(-(-d_in // kb), 512)
    return tk, tk * kb, kb


# ----------------------------------------------------------------------------
# Kernel: K-tiled efm matmul (bf16 x bf16 -> f32 accumulator), then on the last
# K step one fused head matmul + elementwise epilogue + a single lane-dense
# full-width output store.
# ----------------------------------------------------------------------------
def persemon_kernel(
    x_ref,        # (Bp, tk)            bf16  concatenated/padded activations, K-tile
    w_efm_ref,    # (tk, FEAT)          bf16  efm weight, K-tile
    w_heads_ref,  # (FEAT, 128)         bf16  fused [pam | dc | eam] weight (zero padded)
    w_r2_ref,     # (RAM_HIDDEN, 128)   bf16  ram[2] weight placed at XEP_COLS
    small_ref,    # (8, FEAT)           f32   packed tiny residents (see ROW_* layout)
    out_ref,      # (Bp, 128)           f32   packed output slab
    acc_ref,      # (Bp, FEAT)          f32   scratch accumulator
):
    k = pl.program_id(0)

    @pl.when(k == 0)
    def _init():
        acc_ref[...] = jnp.zeros_like(acc_ref)

    # One streaming pass of w_efm serves both branches (rows 0:B are x_p,
    # rows B:2B are x_e, remaining rows are zero padding).
    acc_ref[...] += jnp.dot(
        x_ref[...], w_efm_ref[...], preferred_element_type=jnp.float32
    )

    @pl.when(k == pl.num_programs(0) - 1)
    def _epilogue():
        b_efm = small_ref[ROW_B_EFM:ROW_B_EFM + 1, :]                       # (1, 512)
        b_heads = small_ref[ROW_B_HEADS:ROW_B_HEADS + 1, :OUT_LANES]        # (1, 128)
        b_r1 = small_ref[ROW_B_R1:ROW_B_R1 + 1, :OUT_LANES]
        b_r2 = small_ref[ROW_B_R2:ROW_B_R2 + 1, :OUT_LANES]
        w_r1_0 = small_ref[ROW_W_R1_0:ROW_W_R1_0 + 1, :OUT_LANES]
        w_r1_1 = small_ref[ROW_W_R1_1:ROW_W_R1_1 + 1, :OUT_LANES]

        # bf16 inputs, f32 accumulate -> full MXU rate on the fused-heads matmul.
        feat_bf = (acc_ref[...] + b_efm).astype(jnp.bfloat16)               # (Bp, FEAT)
        heads = (
            jnp.dot(feat_bf, w_heads_ref[...], preferred_element_type=jnp.float32)
            + b_heads
        )                                                                    # (Bp, 128)

        lane = lax.broadcasted_iota(jnp.int32, heads.shape, 1)

        # Elementwise activations computed full-width (VPU/EUP), selected by lane.
        sig_full = 1.0 / (1.0 + jnp.exp(-heads))                             # sigmoid(pam)
        tanh_full = jnp.tanh(heads)                                          # tanh(eam)

        # 2-class softmax over the data_classifier lanes, done full-width with
        # lane masking; denominator via EUP approximate reciprocal.
        is_dc = jnp.logical_and(lane >= DC_COLS[0], lane < DC_COLS[1])
        m = jnp.max(jnp.where(is_dc, heads, _NEG_LARGE), axis=1, keepdims=True)
        e = jnp.where(is_dc, jnp.exp(heads - m), 0.0)
        coh_full = e * pl.reciprocal(
            jnp.sum(e, axis=1, keepdims=True), approx=True
        )

        # ram: Linear(2,128) as two VPU broadcast-MACs (a K=2 MXU pass would be
        # nearly empty), ReLU, then Linear(128,5) on the MXU; its 5 outputs land
        # directly in XEP_COLS via the lane-padded w_r2.
        es0 = heads[:, EAM_COLS[0]:EAM_COLS[0] + 1]                          # pre-tanh eam logits
        es1 = heads[:, EAM_COLS[0] + 1:EAM_COLS[1]]
        h = jnp.maximum(es0 * w_r1_0 + es1 * w_r1_1 + b_r1, 0.0)            # (Bp, 128)
        xep_full = (
            jnp.dot(h.astype(jnp.bfloat16), w_r2_ref[...],
                    preferred_element_type=jnp.float32)
            + b_r2
        )                                                                    # (Bp, 128)

        # Single lane-dense slab -> one unmasked full-width store.
        slab = jnp.where(
            lane < PAM_COLS[1], sig_full,
            jnp.where(
                lane < DC_COLS[1], coh_full,
                jnp.where(lane < EAM_COLS[1], tanh_full, xep_full),
            ),
        )
        out_ref[...] = slab


# ----------------------------------------------------------------------------
# One-time parameter preparation (hoisted out of the per-call path).
# ----------------------------------------------------------------------------
def prepare_params(params, d_in):
    tk, d_in_p, _ = _choose_tiling(d_in)
    bf = jnp.bfloat16

    # Big streaming weight: cast then pad (bf16 only, no padded f32 intermediate).
    w_efm = jnp.pad(params["w_efm"].astype(bf), ((0, d_in_p - d_in), (0, 0)))

    # Fuse the three heads into one lane-padded [FEAT, 128] bf16 weight.
    w_heads = jnp.zeros((FEAT, OUT_LANES), jnp.float32)
    w_heads = w_heads.at[:, PAM_COLS[0]:PAM_COLS[1]].set(params["w_pam"])
    w_heads = w_heads.at[:, DC_COLS[0]:DC_COLS[1]].set(params["w_dc"])
    w_heads = w_heads.at[:, EAM_COLS[0]:EAM_COLS[1]].set(params["w_eam"])
    w_heads = w_heads.astype(bf)

    # ram[2] weight placed so its 5 outputs land directly at XEP_COLS.
    w_r2 = jnp.zeros((RAM_HIDDEN, OUT_LANES), jnp.float32)
    w_r2 = w_r2.at[:, XEP_COLS[0]:XEP_COLS[1]].set(params["w_r2"]).astype(bf)

    # Pack all tiny residents into one (8, FEAT) f32 array -> one BlockSpec.
    small = jnp.zeros((8, FEAT), jnp.float32)
    small = small.at[ROW_B_EFM, :].set(params["b_efm"][0])
    b_heads = jnp.zeros((OUT_LANES,), jnp.float32)
    b_heads = b_heads.at[PAM_COLS[0]:PAM_COLS[1]].set(params["b_pam"][0])
    b_heads = b_heads.at[DC_COLS[0]:DC_COLS[1]].set(params["b_dc"][0])
    b_heads = b_heads.at[EAM_COLS[0]:EAM_COLS[1]].set(params["b_eam"][0])
    small = small.at[ROW_B_HEADS, :OUT_LANES].set(b_heads)
    small = small.at[ROW_B_R1, :OUT_LANES].set(params["b_r1"][0])
    b_r2 = jnp.zeros((OUT_LANES,), jnp.float32)
    b_r2 = b_r2.at[XEP_COLS[0]:XEP_COLS[1]].set(params["b_r2"][0])
    small = small.at[ROW_B_R2, :OUT_LANES].set(b_r2)
    small = small.at[ROW_W_R1_0, :OUT_LANES].set(params["w_r1"][0])
    small = small.at[ROW_W_R1_1, :OUT_LANES].set(params["w_r1"][1])

    return dict(w_efm=w_efm, w_heads=w_heads, w_r2=w_r2, small=small)


# ----------------------------------------------------------------------------
# Per-call wrapper: flatten NCHW, concatenate branches, cast bf16, pad, call
# the kernel, slice the packed output slab apart.
# ----------------------------------------------------------------------------
@jax.jit
def persemon_forward(x_p, x_e, prepared):
    B = x_p.shape[0]
    d_in = x_p.shape[1] * x_p.shape[2] * x_p.shape[3]
    tk, d_in_p, kb = _choose_tiling(d_in)
    assert prepared["w_efm"].shape == (d_in_p, FEAT), "prepared params / input mismatch"
    bp = _round_up(2 * B, 16)          # bf16 sublane granule

    # Concatenate both branches, cast to bf16 BEFORE padding, then pad.
    xc = jnp.concatenate(
        [x_p.reshape(B, d_in), x_e.reshape(B, d_in)], axis=0
    ).astype(jnp.bfloat16)
    x = jnp.pad(xc, ((0, bp - 2 * B), (0, d_in_p - d_in)))

    grid_spec = pltpu.PrefetchScalarGridSpec(
        num_scalar_prefetch=0,
        grid=(kb,),
        in_specs=[
            pl.BlockSpec((bp, tk), lambda k: (0, k)),                # x K-tile
            pl.BlockSpec((tk, FEAT), lambda k: (k, 0)),              # w_efm K-tile
            pl.BlockSpec((FEAT, OUT_LANES), lambda k: (0, 0)),       # fused heads W
            pl.BlockSpec((RAM_HIDDEN, OUT_LANES), lambda k: (0, 0)), # ram[2] W (padded)
            pl.BlockSpec((8, FEAT), lambda k: (0, 0)),               # packed residents
        ],
        out_specs=pl.BlockSpec((bp, OUT_LANES), lambda k: (0, 0)),
        scratch_shapes=[pltpu.VMEM((bp, FEAT), jnp.float32)],
    )

    out = pl.pallas_call(
        persemon_kernel,
        out_shape=jax.ShapeDtypeStruct((bp, OUT_LANES), jnp.float32),
        grid_spec=grid_spec,
        compiler_params=pltpu.CompilerParams(
            dimension_semantics=("arbitrary",),       # K is a reduction axis
            vmem_limit_bytes=32 * 1024 * 1024,        # <= v7x scoped default; plenty
        ),
    )(x, prepared["w_efm"], prepared["w_heads"], prepared["w_r2"], prepared["small"])

    p_score = out[:B, PAM_COLS[0]:PAM_COLS[1]]
    p_coherence = out[:B, DC_COLS[0]:DC_COLS[1]]
    e_score = out[B:2 * B, EAM_COLS[0]:EAM_COLS[1]]
    e_coherence = out[B:2 * B, DC_COLS[0]:DC_COLS[1]]
    x_ep = out[B:2 * B, XEP_COLS[0]:XEP_COLS[1]]
    return p_score, p_coherence, e_score, e_coherence, x_ep


# ----------------------------------------------------------------------------
# Deterministic parameter construction (synthetic; no checkpoint load).
# ----------------------------------------------------------------------------
def make_params(key, d_in):
    keys = jax.random.split(key, 12)

    def lin(kw, kb_, fan_in, fan_out):
        scale = 1.0 / jnp.sqrt(jnp.float32(fan_in))
        w = jax.random.normal(kw, (fan_in, fan_out), jnp.float32) * scale
        b = jax.random.normal(kb_, (1, fan_out), jnp.float32) * 0.01
        return w, b

    w_efm, b_efm = lin(keys[0], keys[1], d_in, FEAT)     # stand-in feature extractor
    w_pam, b_pam = lin(keys[2], keys[3], FEAT, 5)        # nn.Linear(512, 5)
    w_eam, b_eam = lin(keys[4], keys[5], FEAT, 2)        # nn.Linear(512, 2)
    w_r1, b_r1 = lin(keys[6], keys[7], 2, RAM_HIDDEN)    # ram[0]: Linear(2, 128)
    w_r2, b_r2 = lin(keys[8], keys[9], RAM_HIDDEN, 5)    # ram[2]: Linear(128, 5)
    w_dc, b_dc = lin(keys[10], keys[11], FEAT, 2)        # data_classifier: Linear(512, 2)

    return dict(
        w_efm=w_efm, b_efm=b_efm,
        w_pam=w_pam, b_pam=b_pam,
        w_eam=w_eam, b_eam=b_eam,
        w_r1=w_r1, b_r1=b_r1,
        w_r2=w_r2, b_r2=b_r2,
        w_dc=w_dc, b_dc=b_dc,
    )


# Pure-JAX reference (same math as the PyTorch forward; mirrors the kernel's
# bf16 matmul inputs with f32 accumulation so the check stays tight).
def persemon_reference(x_p, x_e, params):
    B = x_p.shape[0]
    d_in = x_p.shape[1] * x_p.shape[2] * x_p.shape[3]
    bf = jnp.bfloat16
    xp = x_p.reshape(B, d_in).astype(bf)
    xe = x_e.reshape(B, d_in).astype(bf)
    w_efm = params["w_efm"].astype(bf)

    def features(x):
        feat = jnp.dot(x, w_efm, preferred_element_type=jnp.float32) + params["b_efm"]
        return feat.astype(bf)

    fp = features(xp)
    p_coh = jax.nn.softmax(
        jnp.dot(fp, params["w_dc"].astype(bf), preferred_element_type=jnp.float32)
        + params["b_dc"], axis=1)
    p_score = jax.nn.sigmoid(
        jnp.dot(fp, params["w_pam"].astype(bf), preferred_element_type=jnp.float32)
        + params["b_pam"])

    fe = features(xe)
    e_coh = jax.nn.softmax(
        jnp.dot(fe, params["w_dc"].astype(bf), preferred_element_type=jnp.float32)
        + params["b_dc"], axis=1)
    es = (jnp.dot(fe, params["w_eam"].astype(bf), preferred_element_type=jnp.float32)
          + params["b_eam"])
    h = jnp.maximum(es @ params["w_r1"] + params["b_r1"], 0.0)
    x_ep = (jnp.dot(h.astype(bf), params["w_r2"].astype(bf),
                    preferred_element_type=jnp.float32) + params["b_r2"])
    e_score = jnp.tanh(es)
    return p_score, p_coh, e_score, e_coh, x_ep


if __name__ == "__main__":
    key = jax.random.PRNGKey(0)
    k_xp, k_xe, k_params = jax.random.split(key, 3)

    # Small NCHW inputs: batch=2, channels=4, spatial=16x16 -> 1024 flat features.
    x_p = jax.random.normal(k_xp, (2, 4, 16, 16), jnp.float32)
    x_e = jax.random.normal(k_xe, (2, 4, 16, 16), jnp.float32)
    d_in = 4 * 16 * 16
    params = make_params(k_params, d_in)

    # One-time weight preparation (hoisted out of the per-call path).
    prepared = jax.block_until_ready(prepare_params(params, d_in))

    outs = persemon_forward(x_p, x_e, prepared)
    outs = jax.block_until_ready(outs)

    refs = persemon_reference(x_p, x_e, params)
    names = ["p_score", "p_coherence", "e_score", "e_coherence", "x_ep"]
    # Tolerance loosened vs. pure f32: efm / head matmuls run bf16 (f32 accum)
    # and the softmax denominator uses the EUP approximate reciprocal.
    for name, got, ref in zip(names, outs, refs):
        assert got.shape == ref.shape, (name, got.shape, ref.shape)
        assert jnp.allclose(got, ref, atol=2e-2, rtol=2e-2), (
            name, float(jnp.max(jnp.abs(got - ref))))

    print("KERNEL_OK")
</pallas_src>

<mosaic_0001>
module attributes {stable_mosaic.version = 11 : i64} {
  func.func @persemon_kernel(%arg0: i32, %arg1: memref<16x1024xbf16, #tpu.memory_space<vmem>>, %arg2: memref<1024x512xbf16, #tpu.memory_space<vmem>>, %arg3: memref<512x128xbf16, #tpu.memory_space<vmem>>, %arg4: memref<128x128xbf16, #tpu.memory_space<vmem>>, %arg5: memref<8x512xf32, #tpu.memory_space<vmem>>, %arg6: memref<16x128xf32, #tpu.memory_space<vmem>>, %arg7: memref<16x512xf32, #tpu.memory_space<vmem>>) attributes {dimension_semantics = [#tpu.dimension_semantics<arbitrary>], iteration_bounds = array<i64: 1>, scalar_prefetch = 0 : i64, scratch_operands = 1 : i64, tpu.core_type = #tpu.core_type<tc>, window_params = [{transform_indices = @transform_0, window_bounds = array<i64: 16, 1024>}, {transform_indices = @transform_1, window_bounds = array<i64: 1024, 512>}, {pipeline_mode = #tpu.pipeline_mode<synchronous>, transform_indices = @transform_2, window_bounds = array<i64: 512, 128>}, {pipeline_mode = #tpu.pipeline_mode<synchronous>, transform_indices = @transform_3, window_bounds = array<i64: 128, 128>}, {pipeline_mode = #tpu.pipeline_mode<synchronous>, transform_indices = @transform_4, window_bounds = array<i64: 8, 512>}, {pipeline_mode = #tpu.pipeline_mode<synchronous>, transform_indices = @transform_5, window_bounds = array<i64: 16, 128>}]} {
    %c0_i32 = arith.constant 0 : i32
    %0 = arith.cmpi eq, %arg0, %c0_i32 : i32
    %1 = arith.extui %0 : i1 to i32
    %c0_i32_0 = arith.constant 0 : i32
    %2 = arith.cmpi ne, %1, %c0_i32_0 : i32
    scf.if %2 {
      %cst_10 = arith.constant 0.000000e+00 : f32
      %12 = vector.broadcast %cst_10 : f32 to vector<16x512xf32>
      %c0_11 = arith.constant 0 : index
      %c0_12 = arith.constant 0 : index
      %13 = vector.load %arg7[%c0_11, %c0_12] : memref<16x512xf32, #tpu.memory_space<vmem>>, vector<16x512xf32>
      tpu.vector_store %arg7[%c0_11, %c0_12], %12 {strides = array<i32>} : memref<16x512xf32, #tpu.memory_space<vmem>>, vector<16x512xf32>,
    } else {
    }
    %c0 = arith.constant 0 : index
    %c0_1 = arith.constant 0 : index
    %3 = vector.load %arg7[%c0, %c0_1] : memref<16x512xf32, #tpu.memory_space<vmem>>, vector<16x512xf32>
    %c0_2 = arith.constant 0 : index
    %c0_3 = arith.constant 0 : index
    %4 = vector.load %arg1[%c0_2, %c0_3] : memref<16x1024xbf16, #tpu.memory_space<vmem>>, vector<16x1024xbf16>
    %c0_4 = arith.constant 0 : index
    %c0_5 = arith.constant 0 : index
    %5 = vector.load %arg2[%c0_4, %c0_5] : memref<1024x512xbf16, #tpu.memory_space<vmem>>, vector<1024x512xbf16>
    %cst = arith.constant dense<0.000000e+00> : vector<16x512xf32>
    %6 = tpu.matmul %4, %5, %cst {dimension_numbers = #tpu.dot_dimension_numbers<[1], [0], [0], [1], [0, 0, 1, 1], [], []>} : vector<16x1024xbf16>, vector<1024x512xbf16>, vector<16x512xf32> -> vector<16x512xf32>
    %7 = arith.addf %3, %6 : vector<16x512xf32>
    %c0_6 = arith.constant 0 : index
    %c0_7 = arith.constant 0 : index
    %8 = vector.load %arg7[%c0_6, %c0_7] : memref<16x512xf32, #tpu.memory_space<vmem>>, vector<16x512xf32>
    tpu.vector_store %arg7[%c0_6, %c0_7], %7 {strides = array<i32>} : memref<16x512xf32, #tpu.memory_space<vmem>>, vector<16x512xf32>,
    %c0_i32_8 = arith.constant 0 : i32
    %9 = arith.cmpi eq, %arg0, %c0_i32_8 : i32
    %10 = arith.extui %9 : i1 to i32
    %c0_i32_9 = arith.constant 0 : i32
    %11 = arith.cmpi ne, %10, %c0_i32_9 : i32
    scf.if %11 {
      %c0_10 = arith.constant 0 : index
      %c0_11 = arith.constant 0 : index
      %12 = vector.load %arg5[%c0_10, %c0_11] : memref<8x512xf32, #tpu.memory_space<vmem>>, vector<1x512xf32>
      %c1 = arith.constant 1 : index
      %c0_12 = arith.constant 0 : index
      %13 = vector.load %arg5[%c1, %c0_12] : memref<8x512xf32, #tpu.memory_space<vmem>>, vector<1x128xf32>
      %c2 = arith.constant 2 : index
      %c0_13 = arith.constant 0 : index
      %14 = vector.load %arg5[%c2, %c0_13] : memref<8x512xf32, #tpu.memory_space<vmem>>, vector<1x128xf32>
      %c3 = arith.constant 3 : index
      %c0_14 = arith.constant 0 : index
      %15 = vector.load %arg5[%c3, %c0_14] : memref<8x512xf32, #tpu.memory_space<vmem>>, vector<1x128xf32>
      %c4 = arith.constant 4 : index
      %c0_15 = arith.constant 0 : index
      %16 = vector.load %arg5[%c4, %c0_15] : memref<8x512xf32, #tpu.memory_space<vmem>>, vector<1x128xf32>
      %c5 = arith.constant 5 : index
      %c0_16 = arith.constant 0 : index
      %17 = vector.load %arg5[%c5, %c0_16] : memref<8x512xf32, #tpu.memory_space<vmem>>, vector<1x128xf32>
      %c0_17 = arith.constant 0 : index
      %c0_18 = arith.constant 0 : index
      %18 = vector.load %arg7[%c0_17, %c0_18] : memref<16x512xf32, #tpu.memory_space<vmem>>, vector<16x512xf32>
      %19 = vector.broadcast %12 : vector<1x512xf32> to vector<16x512xf32>
      %20 = arith.addf %18, %19 : vector<16x512xf32>
      %21 = arith.truncf %20 : vector<16x512xf32> to vector<16x512xbf16>
      %c0_19 = arith.constant 0 : index
      %c0_20 = arith.constant 0 : index
      %22 = vector.load %arg3[%c0_19, %c0_20] : memref<512x128xbf16, #tpu.memory_space<vmem>>, vector<512x128xbf16>
      %cst_21 = arith.constant dense<0.000000e+00> : vector<16x128xf32>
      %23 = tpu.matmul %21, %22, %cst_21 {dimension_numbers = #tpu.dot_dimension_numbers<[1], [0], [0], [1], [0, 0, 1, 1], [], []>} : vector<16x512xbf16>, vector<512x128xbf16>, vector<16x128xf32> -> vector<16x128xf32>
      %24 = vector.broadcast %13 : vector<1x128xf32> to vector<16x128xf32>
      %25 = arith.addf %23, %24 : vector<16x128xf32>
      %26 = tpu.iota {dimensions = array<i32: 1>} : vector<16x128xi32>
      %cst_22 = arith.constant 0.000000e+00 : f32
      %27 = vector.broadcast %cst_22 : f32 to vector<16x128xf32>
      %28 = arith.subf %27, %25 : vector<16x128xf32>
      %29 = math.exp %28 : vector<16x128xf32>
      %cst_23 = arith.constant 1.000000e+00 : f32
      %30 = vector.broadcast %cst_23 : f32 to vector<16x128xf32>
      %31 = arith.addf %30, %29 : vector<16x128xf32>
      %cst_24 = arith.constant 1.000000e+00 : f32
      %32 = vector.broadcast %cst_24 : f32 to vector<16x128xf32>
      %33 = arith.divf %32, %31 : vector<16x128xf32>
      %34 = math.tanh %25 : vector<16x128xf32>
      %c5_i32 = arith.constant 5 : i32
      %35 = vector.broadcast %c5_i32 : i32 to vector<16x128xi32>
      %36 = arith.cmpi sge, %26, %35 : vector<16x128xi32>
      %c7_i32 = arith.constant 7 : i32
      %37 = vector.broadcast %c7_i32 : i32 to vector<16x128xi32>
      %38 = arith.cmpi slt, %26, %37 : vector<16x128xi32>
      %39 = arith.andi %36, %38 : vector<16x128xi1>
      %cst_25 = arith.constant -1.000000e+30 : f32
      %40 = vector.broadcast %cst_25 : f32 to vector<16x128xf32>
      %41 = arith.select %39, %25, %40 : vector<16x128xi1>, vector<16x128xf32>
      %cst_26 = arith.constant dense<0xFF800000> : vector<16xf32>
      %42 = vector.multi_reduction <maximumf>, %41, %cst_26 [1] : vector<16x128xf32> to vector<16xf32>
      %43 = vector.shape_cast %42 : vector<16xf32> to vector<16x1xf32>
      %44 = vector.broadcast %43 : vector<16x1xf32> to vector<16x128xf32>
      %45 = arith.subf %25, %44 : vector<16x128xf32>
      %46 = math.exp %45 : vector<16x128xf32>
      %cst_27 = arith.constant 0.000000e+00 : f32
      %47 = vector.broadcast %cst_27 : f32 to vector<16x128xf32>
      %48 = arith.select %39, %46, %47 : vector<16x128xi1>, vector<16x128xf32>
      %cst_28 = arith.constant dense<0.000000e+00> : vector<16xf32>
      %49 = vector.multi_reduction <add>, %48, %cst_28 [1] : vector<16x128xf32> to vector<16xf32>
      %50 = vector.shape_cast %49 : vector<16xf32> to vector<16x1xf32>
      %51 = tpu.reciprocal %50 {approx = true} : vector<16x1xf32> -> vector<16x1xf32>
      %52 = vector.broadcast %51 : vector<16x1xf32> to vector<16x128xf32>
      %53 = arith.mulf %48, %52 : vector<16x128xf32>
      %54 = vector.extract_strided_slice %25 {offsets = [0, 7], sizes = [16, 1], strides = [1, 1]} : vector<16x128xf32> to vector<16x1xf32>
      %55 = vector.extract_strided_slice %25 {offsets = [0, 8], sizes = [16, 1], strides = [1, 1]} : vector<16x128xf32> to vector<16x1xf32>
      %56 = vector.broadcast %54 : vector<16x1xf32> to vector<16x128xf32>
      %57 = vector.broadcast %16 : vector<1x128xf32> to vector<16x128xf32>
      %58 = arith.mulf %56, %57 : vector<16x128xf32>
      %59 = vector.broadcast %55 : vector<16x1xf32> to vector<16x128xf32>
      %60 = vector.broadcast %17 : vector<1x128xf32> to vector<16x128xf32>
      %61 = arith.mulf %59, %60 : vector<16x128xf32>
      %62 = arith.addf %58, %61 : vector<16x128xf32>
      %63 = vector.broadcast %14 : vector<1x128xf32> to vector<16x128xf32>
      %64 = arith.addf %62, %63 : vector<16x128xf32>
      %cst_29 = arith.constant 0.000000e+00 : f32
      %65 = vector.broadcast %cst_29 : f32 to vector<16x128xf32>
      %66 = arith.maximumf %64, %65 : vector<16x128xf32>
      %67 = arith.truncf %66 : vector<16x128xf32> to vector<16x128xbf16>
      %c0_30 = arith.constant 0 : index
      %c0_31 = arith.constant 0 : index
      %68 = vector.load %arg4[%c0_30, %c0_31] : memref<128x128xbf16, #tpu.memory_space<vmem>>, vector<128x128xbf16>
      %cst_32 = arith.constant dense<0.000000e+00> : vector<16x128xf32>
      %69 = tpu.matmul %67, %68, %cst_32 {dimension_numbers = #tpu.dot_dimension_numbers<[1], [0], [0], [1], [0, 0, 1, 1], [], []>} : vector<16x128xbf16>, vector<128x128xbf16>, vector<16x128xf32> -> vector<16x128xf32>
      %70 = vector.broadcast %15 : vector<1x128xf32> to vector<16x128xf32>
      %71 = arith.addf %69, %70 : vector<16x128xf32>
      %c5_i32_33 = arith.constant 5 : i32
      %72 = vector.broadcast %c5_i32_33 : i32 to vector<16x128xi32>
      %73 = arith.cmpi slt, %26, %72 : vector<16x128xi32>
      %c7_i32_34 = arith.constant 7 : i32
      %74 = vector.broadcast %c7_i32_34 : i32 to vector<16x128xi32>
      %75 = arith.cmpi slt, %26, %74 : vector<16x128xi32>
      %c9_i32 = arith.constant 9 : i32
      %76 = vector.broadcast %c9_i32 : i32 to vector<16x128xi32>
      %77 = arith.cmpi slt, %26, %76 : vector<16x128xi32>
      %78 = arith.select %77, %34, %71 : vector<16x128xi1>, vector<16x128xf32>
      %79 = arith.select %75, %53, %78 : vector<16x128xi1>, vector<16x128xf32>
      %80 = arith.select %73, %33, %79 : vector<16x128xi1>, vector<16x128xf32>
      %c0_35 = arith.constant 0 : index
      %c0_36 = arith.constant 0 : index
      %81 = vector.load %arg6[%c0_35, %c0_36] : memref<16x128xf32, #tpu.memory_space<vmem>>, vector<16x128xf32>
      tpu.vector_store %arg6[%c0_35, %c0_36], %80 {strides = array<i32>} : memref<16x128xf32, #tpu.memory_space<vmem>>, vector<16x128xf32>,
    } else {
    }
    return
  }
  func.func @transform_0(%arg0: i32) -> (i32, i32) {
    %c0_i32 = arith.constant 0 : i32
    %c0_i32_0 = arith.constant 0 : i32
    return %c0_i32, %arg0 : i32, i32
  }
  func.func @transform_1(%arg0: i32) -> (i32, i32) {
    %c0_i32 = arith.constant 0 : i32
    %c0_i32_0 = arith.constant 0 : i32
    return %arg0, %c0_i32 : i32, i32
  }
  func.func @transform_2(%arg0: i32) -> (i32, i32) {
    %c0_i32 = arith.constant 0 : i32
    %c0_i32_0 = arith.constant 0 : i32
    %c0_i32_1 = arith.constant 0 : i32
    return %c0_i32, %c0_i32_0 : i32, i32
  }
  func.func @transform_3(%arg0: i32) -> (i32, i32) {
    %c0_i32 = arith.constant 0 : i32
    %c0_i32_0 = arith.constant 0 : i32
    %c0_i32_1 = arith.constant 0 : i32
    return %c0_i32, %c0_i32_0 : i32, i32
  }
  func.func @transform_4(%arg0: i32) -> (i32, i32) {
    %c0_i32 = arith.constant 0 : i32
    %c0_i32_0 = arith.constant 0 : i32
    %c0_i32_1 = arith.constant 0 : i32
    return %c0_i32, %c0_i32_0 : i32, i32
  }
  func.func @transform_5(%arg0: i32) -> (i32, i32) {
    %c0_i32 = arith.constant 0 : i32
    %c0_i32_0 = arith.constant 0 : i32
    %c0_i32_1 = arith.constant 0 : i32
    return %c0_i32, %c0_i32_0 : i32, i32
  }
}

</mosaic_0001>

<bundles_post_ra>
// kernel: persemon_forward.1
= control target key start
LH: loop header
LB: loop body
LE: loop exit
PB: predicated region body
PF: predicated region fallthrough
CT: control target
= control target key end

     0   :  { %10 = vsyncpa [#allocation4], 0  ;;  %s3456_s18 = smov [#allocation3]   ;;  %s3743_s0 = inlined_call_operand.vmem [shape: bf16[16,1024], index: 0, kind: input, shape index: {}]   ;;  %s3744_s1 = inlined_call_operand.hbm [shape: bf16[1024,512], index: 1, kind: input, shape index: {}]   ;;  %s3745_s2 = inlined_call_operand.vmem [shape: bf16[512,128], index: 2, kind: input, shape index: {}]   ;;  %s3746_s3 = inlined_call_operand.vmem [shape: bf16[128,128], index: 3, kind: input, shape index: {}]   ;;  %s3747_s4 = inlined_call_operand.vmem [shape: f32[8,512], index: 4, kind: input, shape index: {}]   ;;  %s3748_s5 = inlined_call_operand.vmem [shape: f32[16,128], index: 5, kind: output, shape index: {}]  }
   0x1   :  { %s18_s19 = sshll.u32 %s3456_s18, 4  ;;  %s3432_s22 = scalar_lea.hbm %s3744_s1, 32768  ;;  %s19_s19 = int_to_ptr.vmem [resolvable:$true] %s18_s19 }
   0x2   :  { %p3433_p0 = scmp.ne.s32.totalorder %s3744_s1, %s3432_s22  ;;  %p3436_p1 = scmp.lt.u32.totalorder %s3432_s22, %s3744_s1 }
   0x4   :  { %p3438_p2 = pnand %p3436_p1, %p3433_p0 }
   0x6   :  { %3441 = shalt.err (!%p3438_p2)
}
   0x7   :  { %s3442_s27 = scalar_lea.vmem %s19_s19, 32768  ;;  %p3447_p4 = scmp.lt.s32.totalorder %s19_s19, %s19_s19 }
   0x8   :  { %p3443_p3 = scmp.ne.s32.totalorder %s19_s19, %s3442_s27  ;;  %p3448_p5 = scmp.lt.s32.totalorder %s3442_s27, %s3442_s27 }
   0xa   :  { %p3449_p6 = por %p3448_p5, %p3447_p4 }
   0xc   :  { %p3450_p7 = pnand %p3449_p6, %p3443_p3 }
   0xe   :  { %3453 = shalt.err (!%p3450_p7)
}
   0xf   :  { %s3457_s28 = smov 256   ;;  %s3458_s29 = smov 16  }
  0x10   :  { %24 = dma.hbm_to_vmem [thread:$0]  %s3744_s1, 32768, %s19_s19, [#allocation4], %s3457_s28, %s3457_s28, %s3458_s29  }
  0x11   :  { %3454 = dma.done.wait [#allocation4], 32768  }
  0x12   :  { %3455 = vsyncadd [#allocation4], 4294934528  ;;  %v2988_v0 = vld [vmem:[#allocation3 + $0x4] ss:$16 sps:$4 sm:$0xff]   ;;  %v2990_v1 = vld [vmem:[#allocation3 + $0xc] ss:$16 sps:$4 sm:$0xff]  }
  0x13   :  { %1639 = vmatprep.subr.bf16.mxu0 %v2988_v0  ;;  %v2992_v2 = vld [vmem:[#allocation3] ss:$16 sps:$4 sm:$0xff]   ;;  %v2993_v3 = vld [vmem:[#allocation3 + $0x8] ss:$16 sps:$4 sm:$0xff]   ;;  %1811 = vmatprep.subr.bf16.mxu1 %v2990_v1  ;;  %v2994_v4 = vld [vmem:[#allocation3 + $0x24] ss:$16 sps:$4 sm:$0xff]  }
  0x14   :  { %1640 = vmatpush1.bf16.msra.mxu0 %v2992_v2  ;;  %1812 = vmatpush1.bf16.msra.mxu1 %v2993_v3  ;;  %v2996_v5 = vld [vmem:[#allocation3 + $0x2c] ss:$16 sps:$4 sm:$0xff]   ;;  %v2998_v6 = vld [vmem:[#allocation3 + $0x20] ss:$16 sps:$4 sm:$0xff]   ;;  %v2999_v7 = vld [vmem:[#allocation3 + $0x28] ss:$16 sps:$4 sm:$0xff]  }
  0x15   :  { %1641 = vmatprep.subr.bf16.mxu0 %v2994_v4  ;;  %1813 = vmatprep.subr.bf16.mxu1 %v2996_v5  ;;  %v3000_v8 = vld [vmem:[#allocation3 + $0x44] ss:$16 sps:$4 sm:$0xff]   ;;  %v3002_v9 = vld [vmem:[#allocation3 + $0x4c] ss:$16 sps:$4 sm:$0xff]   ;;  %v3004_v10 = vld [vmem:[#allocation3 + $0x40] ss:$16 sps:$4 sm:$0xff]  }
  0x16   :  { %v3005_v11 = vld [vmem:[#allocation3 + $0x48] ss:$16 sps:$4 sm:$0xff]   ;;  %v3006_v12 = vld [vmem:[#allocation3 + $0x64] ss:$16 sps:$4 sm:$0xff]   ;;  %v3008_v13 = vld [vmem:[#allocation3 + $0x6c] ss:$16 sps:$4 sm:$0xff]  }
  0x17   :  { %v3010_v14 = vld [vmem:[#allocation3 + $0x60] ss:$16 sps:$4 sm:$0xff]   ;;  %v3011_v15 = vld [vmem:[#allocation3 + $0x68] ss:$16 sps:$4 sm:$0xff]   ;;  %v3012_v16 = vld [vmem:[#allocation3 + $0x84] ss:$16 sps:$4 sm:$0xff]  }
  0x18   :  { %1642 = vmatpush1.bf16.msra.mxu0 %v2998_v6  ;;  %1814 = vmatpush1.bf16.msra.mxu1 %v2999_v7  ;;  %v3014_v17 = vld [vmem:[#allocation3 + $0x8c] ss:$16 sps:$4 sm:$0xff]   ;;  %v3016_v18 = vld [vmem:[#allocation3 + $0x80] ss:$16 sps:$4 sm:$0xff]   ;;  %v3017_v19 = vld [vmem:[#allocation3 + $0x88] ss:$16 sps:$4 sm:$0xff]  }
  0x19   :  { %1643 = vmatprep.subr.bf16.mxu0 %v3000_v8  ;;  %1815 = vmatprep.subr.bf16.mxu1 %v3002_v9  ;;  %v3018_v20 = vld [vmem:[#allocation3 + $0xa4] ss:$16 sps:$4 sm:$0xff]   ;;  %v3020_v21 = vld [vmem:[#allocation3 + $0xac] ss:$16 sps:$4 sm:$0xff]   ;;  %v3022_v22 = vld [vmem:[#allocation3 + $0xa0] ss:$16 sps:$4 sm:$0xff]  }
  0x1a   :  { %v3023_v23 = vld [vmem:[#allocation3 + $0xa8] ss:$16 sps:$4 sm:$0xff]   ;;  %v3024_v24 = vld [vmem:[#allocation3 + $0xc4] ss:$16 sps:$4 sm:$0xff]   ;;  %v3026_v25 = vld [vmem:[#allocation3 + $0xcc] ss:$16 sps:$4 sm:$0xff]  }
  0x1b   :  { %v3028_v26 = vld [vmem:[#allocation3 + $0xc0] ss:$16 sps:$4 sm:$0xff]   ;;  %v3029_v27 = vld [vmem:[#allocation3 + $0xc8] ss:$16 sps:$4 sm:$0xff]   ;;  %v3030_v28 = vld [vmem:[#allocation3 + $0xe4] ss:$16 sps:$4 sm:$0xff]  }
  0x1c   :  { %1644 = vmatpush1.bf16.msra.mxu0 %v3004_v10  ;;  %1816 = vmatpush1.bf16.msra.mxu1 %v3005_v11  ;;  %v3032_v29 = vld [vmem:[#allocation3 + $0xec] ss:$16 sps:$4 sm:$0xff]   ;;  %v3034_v30 = vld [vmem:[#allocation3 + $0xe0] ss:$16 sps:$4 sm:$0xff]   ;;  %v3035_v31 = vld [vmem:[#allocation3 + $0xe8] ss:$16 sps:$4 sm:$0xff]  }
  0x1d   :  { %1645 = vmatprep.subr.bf16.mxu0 %v3006_v12  ;;  %1817 = vmatprep.subr.bf16.mxu1 %v3008_v13  ;;  %v3036_v32 = vld [vmem:[#allocation3 + $0x104] ss:$16 sps:$4 sm:$0xff]   ;;  %v3038_v33 = vld [vmem:[#allocation3 + $0x10c] ss:$16 sps:$4 sm:$0xff]   ;;  %v3040_v34 = vld [vmem:[#allocation3 + $0x100] ss:$16 sps:$4 sm:$0xff]  }
  0x1e   :  { %v3041_v35 = vld [vmem:[#allocation3 + $0x108] ss:$16 sps:$4 sm:$0xff]   ;;  %v3042_v36 = vld [vmem:[#allocation3 + $0x124] ss:$16 sps:$4 sm:$0xff]   ;;  %v3044_v37 = vld [vmem:[#allocation3 + $0x12c] ss:$16 sps:$4 sm:$0xff]  }
  0x1f   :  { %v3046_v38 = vld [vmem:[#allocation3 + $0x120] ss:$16 sps:$4 sm:$0xff]   ;;  %v3047_v39 = vld [vmem:[#allocation3 + $0x128] ss:$16 sps:$4 sm:$0xff]   ;;  %v3048_v40 = vld [vmem:[#allocation3 + $0x144] ss:$16 sps:$4 sm:$0xff]  }
  0x20   :  { %1646 = vmatpush1.bf16.msra.mxu0 %v3010_v14  ;;  %1818 = vmatpush1.bf16.msra.mxu1 %v3011_v15  ;;  %v3050_v41 = vld [vmem:[#allocation3 + $0x14c] ss:$16 sps:$4 sm:$0xff]   ;;  %v3052_v42 = vld [vmem:[#allocation3 + $0x140] ss:$16 sps:$4 sm:$0xff]   ;;  %v3053_v43 = vld [vmem:[#allocation3 + $0x148] ss:$16 sps:$4 sm:$0xff]  }
  0x21   :  { %1647 = vmatprep.subr.bf16.mxu0 %v3012_v16  ;;  %1819 = vmatprep.subr.bf16.mxu1 %v3014_v17  ;;  %v3054_v44 = vld [vmem:[#allocation3 + $0x164] ss:$16 sps:$4 sm:$0xff]   ;;  %v3056_v45 = vld [vmem:[#allocation3 + $0x16c] ss:$16 sps:$4 sm:$0xff]   ;;  %v3058_v48 = vld [vmem:[#allocation3 + $0x160] ss:$16 sps:$4 sm:$0xff]  }
  0x22   :  { %v55_v46 = vld [vmem:[%s3743_s0] sm:$0xff]  ;;  %v3059_v49 = vld [vmem:[#allocation3 + $0x168] ss:$16 sps:$4 sm:$0xff]   ;;  %v3062_v52 = vld [vmem:[#allocation3 + $0x18c] ss:$16 sps:$4 sm:$0xff]   ;;  %vm3462_vm0 = vmmov 0  }
  0x23   :  { %v59_v47 = vld [vmem:[%s3743_s0 + $0x20] sm:$0xff]  ;;  %v3065_v54 = vld [vmem:[#allocation3 + $0x188] ss:$16 sps:$4 sm:$0xff]   ;;  %v3068_v56 = vld [vmem:[#allocation3 + $0x1ac] ss:$16 sps:$4 sm:$0xff]  }
  0x24   :  { %1648 = vmatpush1.bf16.msra.mxu0 %v3016_v18  ;;  %1820 = vmatpush1.bf16.msra.mxu1 %v3017_v19  ;;  %v2578_v50 = vcombine.high %v55_v46, %v59_v47  ;;  %v3060_v51 = vld [vmem:[#allocation3 + $0x184] ss:$16 sps:$4 sm:$0xff]   ;;  %v3064_v53 = vld [vmem:[#allocation3 + $0x180] ss:$16 sps:$4 sm:$0xff]   ;;  %v3071_v58 = vld [vmem:[#allocation3 + $0x1a8] ss:$16 sps:$4 sm:$0xff]   ;;  %v2577_v5 = vcombine.low %v55_v46, %v59_v47 }
  0x25   :  { %1649 = vmatprep.subr.bf16.mxu0 %v3018_v20  ;;  %1821 = vmatprep.subr.bf16.mxu1 %v3020_v21  ;;  %v3066_v55 = vld [vmem:[#allocation3 + $0x1a4] ss:$16 sps:$4 sm:$0xff]   ;;  %v3070_v57 = vld [vmem:[#allocation3 + $0x1a0] ss:$16 sps:$4 sm:$0xff]   ;;  %v3074_v60 = vld [vmem:[#allocation3 + $0x1cc] ss:$16 sps:$4 sm:$0xff]  }
  0x26   :  { %1671 = vmatprep.mubr.bf16.mxu0 %v2578_v50  ;;  %1843 = vmatprep.mubr.bf16.mxu1 %v2578_v50  ;;  %v3072_v59 = vld [vmem:[#allocation3 + $0x1c4] ss:$16 sps:$4 sm:$0xff]   ;;  %v3076_v61 = vld [vmem:[#allocation3 + $0x1c0] ss:$16 sps:$4 sm:$0xff]   ;;  %v3077_v62 = vld [vmem:[#allocation3 + $0x1c8] ss:$16 sps:$4 sm:$0xff]  }
  0x27   :  { %v3078_v63 = vld [vmem:[#allocation3 + $0x1e4] ss:$16 sps:$4 sm:$0xff]   ;;  %v3080_v0 = vld [vmem:[#allocation3 + $0x1ec] ss:$16 sps:$4 sm:$0xff]   ;;  %v3082_v1 = vld [vmem:[#allocation3 + $0x1e0] ss:$16 sps:$4 sm:$0xff]  }
  0x28   :  { %1650 = vmatpush1.bf16.msra.mxu0 %v3022_v22  ;;  %1822 = vmatpush1.bf16.msra.mxu1 %v3023_v23  ;;  %v3083_v2 = vld [vmem:[#allocation3 + $0x1e8] ss:$16 sps:$4 sm:$0xff]   ;;  %v3086_v3 = vld [vmem:[#allocation3 + $0x204] ss:$16 sps:$4 sm:$0xff]   ;;  %v3089_v4 = vld [vmem:[#allocation3 + $0x20c] ss:$16 sps:$4 sm:$0xff]  }
  0x29   :  { %1651 = vmatprep.subr.bf16.mxu0 %v3024_v24  ;;  %1823 = vmatprep.subr.bf16.mxu1 %v3026_v25  ;;  %v3084_v6 = vld [vmem:[#allocation3 + $0x200] ss:$16 sps:$4 sm:$0xff]   ;;  %v3087_v7 = vld [vmem:[#allocation3 + $0x208] ss:$16 sps:$4 sm:$0xff]   ;;  %v3092_v8 = vld [vmem:[#allocation3 + $0x224] ss:$16 sps:$4 sm:$0xff]  }
  0x2a   :  { %v3095_v9 = vld [vmem:[#allocation3 + $0x22c] ss:$16 sps:$4 sm:$0xff]   ;;  %v3090_v10 = vld [vmem:[#allocation3 + $0x220] ss:$16 sps:$4 sm:$0xff]   ;;  %v3093_v11 = vld [vmem:[#allocation3 + $0x228] ss:$16 sps:$4 sm:$0xff]  }
  0x2b   :  { %v3098_v12 = vld [vmem:[#allocation3 + $0x244] ss:$16 sps:$4 sm:$0xff]   ;;  %v3101_v13 = vld [vmem:[#allocation3 + $0x24c] ss:$16 sps:$4 sm:$0xff]   ;;  %v3096_v14 = vld [vmem:[#allocation3 + $0x240] ss:$16 sps:$4 sm:$0xff]  }
  0x2c   :  { %1652 = vmatpush1.bf16.msra.mxu0 %v3028_v26  ;;  %1824 = vmatpush1.bf16.msra.mxu1 %v3029_v27  ;;  %v3099_v15 = vld [vmem:[#allocation3 + $0x248] ss:$16 sps:$4 sm:$0xff]   ;;  %v3104_v16 = vld [vmem:[#allocation3 + $0x264] ss:$16 sps:$4 sm:$0xff]   ;;  %v3107_v17 = vld [vmem:[#allocation3 + $0x26c] ss:$16 sps:$4 sm:$0xff]  }
  0x2d   :  { %1653 = vmatprep.subr.bf16.mxu0 %v3030_v28  ;;  %1825 = vmatprep.subr.bf16.mxu1 %v3032_v29  ;;  %v3102_v18 = vld [vmem:[#allocation3 + $0x260] ss:$16 sps:$4 sm:$0xff]   ;;  %v3105_v19 = vld [vmem:[#allocation3 + $0x268] ss:$16 sps:$4 sm:$0xff]   ;;  %v3110_v20 = vld [vmem:[#allocation3 + $0x284] ss:$16 sps:$4 sm:$0xff]  }
  0x2e   :  { %v3113_v21 = vld [vmem:[#allocation3 + $0x28c] ss:$16 sps:$4 sm:$0xff]   ;;  %v3108_v22 = vld [vmem:[#allocation3 + $0x280] ss:$16 sps:$4 sm:$0xff]   ;;  %v3111_v23 = vld [vmem:[#allocation3 + $0x288] ss:$16 sps:$4 sm:$0xff]  }
  0x2f   :  { %v3116_v24 = vld [vmem:[#allocation3 + $0x2a4] ss:$16 sps:$4 sm:$0xff]   ;;  %v3119_v25 = vld [vmem:[#allocation3 + $0x2ac] ss:$16 sps:$4 sm:$0xff]   ;;  %v3114_v26 = vld [vmem:[#allocation3 + $0x2a0] ss:$16 sps:$4 sm:$0xff]  }
  0x30   :  { %1654 = vmatpush1.bf16.msra.mxu0 %v3034_v30  ;;  %1826 = vmatpush1.bf16.msra.mxu1 %v3035_v31  ;;  %v3117_v27 = vld [vmem:[#allocation3 + $0x2a8] ss:$16 sps:$4 sm:$0xff]   ;;  %v3122_v28 = vld [vmem:[#allocation3 + $0x2c4] ss:$16 sps:$4 sm:$0xff]   ;;  %v3125_v29 = vld [vmem:[#allocation3 + $0x2cc] ss:$16 sps:$4 sm:$0xff]  }
  0x31   :  { %1655 = vmatprep.subr.bf16.mxu0 %v3036_v32  ;;  %1827 = vmatprep.subr.bf16.mxu1 %v3038_v33  ;;  %v3514_v30 = vld [vmem:[%s3743_s0 + $0x8] sm:$0xff]  ;;  %v3120_v32 = vld [vmem:[#allocation3 + $0x2c0] ss:$16 sps:$4 sm:$0xff]   ;;  %v3146_v47 = vld [vmem:[#allocation3 + $0x344] ss:$16 sps:$4 sm:$0xff]  }
  0x32   :  { %v3519_v31 = vld [vmem:[%s3743_s0 + $0x28] sm:$0xff] }
  0x33   :  { %v3123_v33 = vld [vmem:[#allocation3 + $0x2c8] ss:$16 sps:$4 sm:$0xff]  }
  0x34   :  { %1656 = vmatpush1.bf16.msra.mxu0 %v3040_v34  ;;  %1828 = vmatpush1.bf16.msra.mxu1 %v3041_v35  ;;  %v2580_v34 = vcombine.high %v3514_v30, %v3519_v31  ;;  %v3128_v35 = vld [vmem:[#allocation3 + $0x2e4] ss:$16 sps:$4 sm:$0xff]   ;;  %v3141_v46 = vld [vmem:[#allocation3 + $0x328] ss:$16 sps:$4 sm:$0xff]  }
  0x35   :  { %1657 = vmatprep.subr.bf16.mxu0 %v3042_v36  ;;  %1829 = vmatprep.subr.bf16.mxu1 %v3044_v37  ;;  %v3131_v36 = vld [vmem:[#allocation3 + $0x2ec] ss:$16 sps:$4 sm:$0xff]   ;;  %v3126_v37 = vld [vmem:[#allocation3 + $0x2e0] ss:$16 sps:$4 sm:$0xff]   ;;  %v3147_v50 = vld [vmem:[#allocation3 + $0x348] ss:$16 sps:$4 sm:$0xff]  }
  0x38   :  { %1658 = vmatpush1.bf16.msra.mxu0 %v3046_v38  ;;  %1830 = vmatpush1.bf16.msra.mxu1 %v3047_v39  ;;  %v3129_v38 = vld [vmem:[#allocation3 + $0x2e8] ss:$16 sps:$4 sm:$0xff]   ;;  %v3134_v39 = vld [vmem:[#allocation3 + $0x304] ss:$16 sps:$4 sm:$0xff]  }
  0x39   :  { %1659 = vmatprep.subr.bf16.mxu0 %v3048_v40  ;;  %1831 = vmatprep.subr.bf16.mxu1 %v3050_v41  ;;  %v3137_v40 = vld [vmem:[#allocation3 + $0x30c] ss:$16 sps:$4 sm:$0xff]   ;;  %v3132_v41 = vld [vmem:[#allocation3 + $0x300] ss:$16 sps:$4 sm:$0xff]  }
  0x3c   :  { %1660 = vmatpush1.bf16.msra.mxu0 %v3052_v42  ;;  %1832 = vmatpush1.bf16.msra.mxu1 %v3053_v43  ;;  %v3135_v42 = vld [vmem:[#allocation3 + $0x308] ss:$16 sps:$4 sm:$0xff]   ;;  %v3140_v43 = vld [vmem:[#allocation3 + $0x324] ss:$16 sps:$4 sm:$0xff]  }
  0x3d   :  { %1661 = vmatprep.subr.bf16.mxu0 %v3054_v44  ;;  %1833 = vmatprep.subr.bf16.mxu1 %v3056_v45  ;;  %v3143_v44 = vld [vmem:[#allocation3 + $0x32c] ss:$16 sps:$4 sm:$0xff]   ;;  %v3138_v45 = vld [vmem:[#allocation3 + $0x320] ss:$16 sps:$4 sm:$0xff]  }
  0x40   :  { %1662 = vmatpush1.bf16.msra.mxu0 %v3058_v48  ;;  %1834 = vmatpush1.bf16.msra.mxu1 %v3059_v49  ;;  %v3149_v48 = vld [vmem:[#allocation3 + $0x34c] ss:$16 sps:$4 sm:$0xff]   ;;  %v3144_v49 = vld [vmem:[#allocation3 + $0x340] ss:$16 sps:$4 sm:$0xff]  }
  0x41   :  { %1663 = vmatprep.subr.bf16.mxu0 %v3060_v51  ;;  %1835 = vmatprep.subr.bf16.mxu1 %v3062_v52  ;;  %v3152_v51 = vld [vmem:[#allocation3 + $0x364] ss:$16 sps:$4 sm:$0xff]   ;;  %v3155_v52 = vld [vmem:[#allocation3 + $0x36c] ss:$16 sps:$4 sm:$0xff]  }
  0x44   :  { %1664 = vmatpush1.bf16.msra.mxu0 %v3064_v53  ;;  %1836 = vmatpush1.bf16.msra.mxu1 %v3065_v54  ;;  %v3150_v53 = vld [vmem:[#allocation3 + $0x360] ss:$16 sps:$4 sm:$0xff]   ;;  %v3153_v54 = vld [vmem:[#allocation3 + $0x368] ss:$16 sps:$4 sm:$0xff]  }
  0x45   :  { %1665 = vmatprep.subr.bf16.mxu0 %v3066_v55  ;;  %1837 = vmatprep.subr.bf16.mxu1 %v3068_v56  ;;  %v3158_v55 = vld [vmem:[#allocation3 + $0x384] ss:$16 sps:$4 sm:$0xff]   ;;  %v3161_v56 = vld [vmem:[#allocation3 + $0x38c] ss:$16 sps:$4 sm:$0xff]  }
  0x48   :  { %1666 = vmatpush1.bf16.msra.mxu0 %v3070_v57  ;;  %1838 = vmatpush1.bf16.msra.mxu1 %v3071_v58  ;;  %v3156_v57 = vld [vmem:[#allocation3 + $0x380] ss:$16 sps:$4 sm:$0xff]   ;;  %v3159_v58 = vld [vmem:[#allocation3 + $0x388] ss:$16 sps:$4 sm:$0xff]  }
  0x49   :  { %1667 = vmatprep.subr.bf16.mxu0 %v3072_v59  ;;  %1839 = vmatprep.subr.bf16.mxu1 %v3074_v60  ;;  %v3164_v59 = vld [vmem:[#allocation3 + $0x3a4] ss:$16 sps:$4 sm:$0xff]   ;;  %v3167_v60 = vld [vmem:[#allocation3 + $0x3ac] ss:$16 sps:$4 sm:$0xff]  }
  0x4c   :  { %1668 = vmatpush1.bf16.msra.mxu0 %v3076_v61  ;;  %1840 = vmatpush1.bf16.msra.mxu1 %v3077_v62  ;;  %v3162_v61 = vld [vmem:[#allocation3 + $0x3a0] ss:$16 sps:$4 sm:$0xff]   ;;  %v3165_v62 = vld [vmem:[#allocation3 + $0x3a8] ss:$16 sps:$4 sm:$0xff]  }
  0x4d   :  { %1669 = vmatprep.subr.bf16.mxu0 %v3078_v63  ;;  %1841 = vmatprep.subr.bf16.mxu1 %v3080_v0  ;;  %v3170_v63 = vld [vmem:[#allocation3 + $0x3c4] ss:$16 sps:$4 sm:$0xff]   ;;  %v3173_v0 = vld [vmem:[#allocation3 + $0x3cc] ss:$16 sps:$4 sm:$0xff]  }
  0x50   :  { %1670 = vmatpush1.bf16.msra.mxu0 %v3082_v1  ;;  %1842 = vmatpush1.bf16.msra.mxu1 %v3083_v2  ;;  %v3168_v1 = vld [vmem:[#allocation3 + $0x3c0] ss:$16 sps:$4 sm:$0xff]   ;;  %v3171_v2 = vld [vmem:[#allocation3 + $0x3c8] ss:$16 sps:$4 sm:$0xff]  }
  0x51   :  { %1682 = vmatprep.subr.bf16.mxu0 %v3086_v3  ;;  %1854 = vmatprep.subr.bf16.mxu1 %v3089_v4  ;;  %v3176_v3 = vld [vmem:[#allocation3 + $0x3e4] ss:$16 sps:$4 sm:$0xff]   ;;  %v3179_v4 = vld [vmem:[#allocation3 + $0x3ec] ss:$16 sps:$4 sm:$0xff]  }
  0x53   :  { %1672 = vmatmul.mubr.bf16.vlgmr.msra.gmra.mrb[0].mxu0 %v2577_v5  ;;  %1844 = vmatmul.mubr.bf16.vlgmr.msra.gmra.mrb[0].mxu1 %v2577_v5  ;;  %v3174_v5 = vld [vmem:[#allocation3 + $0x3e0] ss:$16 sps:$4 sm:$0xff]  }
  0x54   :  { %1683 = vmatpush1.bf16.msra.mxu0 %v3084_v6  ;;  %1855 = vmatpush1.bf16.msra.mxu1 %v3087_v7  ;;  %v3177_v6 = vld [vmem:[#allocation3 + $0x3e8] ss:$16 sps:$4 sm:$0xff]   ;;  %v3182_v7 = vld [vmem:[#allocation3 + $0x404] ss:$16 sps:$4 sm:$0xff]  }
  0x55   :  { %1684 = vmatprep.subr.bf16.mxu0 %v3092_v8  ;;  %1856 = vmatprep.subr.bf16.mxu1 %v3095_v9  ;;  %v3185_v8 = vld [vmem:[#allocation3 + $0x40c] ss:$16 sps:$4 sm:$0xff]   ;;  %v2579_v9 = vcombine.low %v3514_v30, %v3519_v31  ;;  %v3207_v30 = vld [vmem:[#allocation3 + $0x488] ss:$16 sps:$4 sm:$0xff]   ;;  %v3212_v31 = vld [vmem:[#allocation3 + $0x4a4] ss:$16 sps:$4 sm:$0xff]  }
  0x56   :  { %1714 = vmatprep.mubr.bf16.mxu0 %v2580_v34  ;;  %1886 = vmatprep.mubr.bf16.mxu1 %v2580_v34  ;;  %v3213_v34 = vld [vmem:[#allocation3 + $0x4a8] ss:$16 sps:$4 sm:$0xff]  }
  0x58   :  { %1685 = vmatpush1.bf16.msra.mxu0 %v3090_v10  ;;  %1857 = vmatpush1.bf16.msra.mxu1 %v3093_v11  ;;  %v3180_v10 = vld [vmem:[#allocation3 + $0x400] ss:$16 sps:$4 sm:$0xff]   ;;  %v3183_v11 = vld [vmem:[#allocation3 + $0x408] ss:$16 sps:$4 sm:$0xff]  }
  0x59   :  { %1686 = vmatprep.subr.bf16.mxu0 %v3098_v12  ;;  %1858 = vmatprep.subr.bf16.mxu1 %v3101_v13  ;;  %v3188_v12 = vld [vmem:[#allocation3 + $0x424] ss:$16 sps:$4 sm:$0xff]   ;;  %v3191_v13 = vld [vmem:[#allocation3 + $0x42c] ss:$16 sps:$4 sm:$0xff]  }
  0x5c   :  { %1687 = vmatpush1.bf16.msra.mxu0 %v3096_v14  ;;  %1859 = vmatpush1.bf16.msra.mxu1 %v3099_v15  ;;  %v3528_v14 = vld [vmem:[%s3743_s0 + $0x10] sm:$0xff] }
  0x5d   :  { %1688 = vmatprep.subr.bf16.mxu0 %v3104_v16  ;;  %1860 = vmatprep.subr.bf16.mxu1 %v3107_v17  ;;  %v3533_v15 = vld [vmem:[%s3743_s0 + $0x30] sm:$0xff] }
  0x5e   :  { %v2582_v16 = vcombine.high %v3528_v14, %v3533_v15  ;;  %v3186_v17 = vld [vmem:[#allocation3 + $0x420] ss:$16 sps:$4 sm:$0xff]  }
  0x60   :  { %1689 = vmatpush1.bf16.msra.mxu0 %v3102_v18  ;;  %1861 = vmatpush1.bf16.msra.mxu1 %v3105_v19  ;;  %v3189_v18 = vld [vmem:[#allocation3 + $0x428] ss:$16 sps:$4 sm:$0xff]   ;;  %v3194_v19 = vld [vmem:[#allocation3 + $0x444] ss:$16 sps:$4 sm:$0xff]  }
  0x61   :  { %1690 = vmatprep.subr.bf16.mxu0 %v3110_v20  ;;  %1862 = vmatprep.subr.bf16.mxu1 %v3113_v21  ;;  %v3197_v20 = vld [vmem:[#allocation3 + $0x44c] ss:$16 sps:$4 sm:$0xff]   ;;  %v3192_v21 = vld [vmem:[#allocation3 + $0x440] ss:$16 sps:$4 sm:$0xff]  }
  0x64   :  { %1691 = vmatpush1.bf16.msra.mxu0 %v3108_v22  ;;  %1863 = vmatpush1.bf16.msra.mxu1 %v3111_v23  ;;  %v3195_v22 = vld [vmem:[#allocation3 + $0x448] ss:$16 sps:$4 sm:$0xff]   ;;  %v3200_v23 = vld [vmem:[#allocation3 + $0x464] ss:$16 sps:$4 sm:$0xff]  }
  0x65   :  { %1692 = vmatprep.subr.bf16.mxu0 %v3116_v24  ;;  %1864 = vmatprep.subr.bf16.mxu1 %v3119_v25  ;;  %v3203_v24 = vld [vmem:[#allocation3 + $0x46c] ss:$16 sps:$4 sm:$0xff]   ;;  %v3198_v25 = vld [vmem:[#allocation3 + $0x460] ss:$16 sps:$4 sm:$0xff]  }
  0x68   :  { %1693 = vmatpush1.bf16.msra.mxu0 %v3114_v26  ;;  %1865 = vmatpush1.bf16.msra.mxu1 %v3117_v27  ;;  %v3201_v26 = vld [vmem:[#allocation3 + $0x468] ss:$16 sps:$4 sm:$0xff]   ;;  %v3206_v27 = vld [vmem:[#allocation3 + $0x484] ss:$16 sps:$4 sm:$0xff]  }
  0x69   :  { %1694 = vmatprep.subr.bf16.mxu0 %v3122_v28  ;;  %1866 = vmatprep.subr.bf16.mxu1 %v3125_v29  ;;  %v3209_v28 = vld [vmem:[#allocation3 + $0x48c] ss:$16 sps:$4 sm:$0xff]   ;;  %v3204_v29 = vld [vmem:[#allocation3 + $0x480] ss:$16 sps:$4 sm:$0xff]  }
  0x6c   :  { %1695 = vmatpush1.bf16.msra.mxu0 %v3120_v32  ;;  %1867 = vmatpush1.bf16.msra.mxu1 %v3123_v33  ;;  %v3215_v32 = vld [vmem:[#allocation3 + $0x4ac] ss:$16 sps:$4 sm:$0xff]   ;;  %v3210_v33 = vld [vmem:[#allocation3 + $0x4a0] ss:$16 sps:$4 sm:$0xff]  }
  0x6d   :  { %1696 = vmatprep.subr.bf16.mxu0 %v3128_v35  ;;  %1868 = vmatprep.subr.bf16.mxu1 %v3131_v36  ;;  %v3218_v35 = vld [vmem:[#allocation3 + $0x4c4] ss:$16 sps:$4 sm:$0xff]   ;;  %v3221_v36 = vld [vmem:[#allocation3 + $0x4cc] ss:$16 sps:$4 sm:$0xff]  }
  0x70   :  { %1697 = vmatpush1.bf16.msra.mxu0 %v3126_v37  ;;  %1869 = vmatpush1.bf16.msra.mxu1 %v3129_v38  ;;  %v3216_v37 = vld [vmem:[#allocation3 + $0x4c0] ss:$16 sps:$4 sm:$0xff]   ;;  %v3219_v38 = vld [vmem:[#allocation3 + $0x4c8] ss:$16 sps:$4 sm:$0xff]  }
  0x71   :  { %1698 = vmatprep.subr.bf16.mxu0 %v3134_v39  ;;  %1870 = vmatprep.subr.bf16.mxu1 %v3137_v40  ;;  %v3224_v39 = vld [vmem:[#allocation3 + $0x4e4] ss:$16 sps:$4 sm:$0xff]   ;;  %v3227_v40 = vld [vmem:[#allocation3 + $0x4ec] ss:$16 sps:$4 sm:$0xff]  }
  0x74   :  { %1699 = vmatpush1.bf16.msra.mxu0 %v3132_v41  ;;  %1871 = vmatpush1.bf16.msra.mxu1 %v3135_v42  ;;  %v3222_v41 = vld [vmem:[#allocation3 + $0x4e0] ss:$16 sps:$4 sm:$0xff]   ;;  %v3225_v42 = vld [vmem:[#allocation3 + $0x4e8] ss:$16 sps:$4 sm:$0xff]  }
  0x75   :  { %1700 = vmatprep.subr.bf16.mxu0 %v3140_v43  ;;  %1872 = vmatprep.subr.bf16.mxu1 %v3143_v44  ;;  %v3230_v43 = vld [vmem:[#allocation3 + $0x504] ss:$16 sps:$4 sm:$0xff]   ;;  %v3233_v44 = vld [vmem:[#allocation3 + $0x50c] ss:$16 sps:$4 sm:$0xff]  }
  0x78   :  { %1701 = vmatpush1.bf16.msra.mxu0 %v3138_v45  ;;  %1873 = vmatpush1.bf16.msra.mxu1 %v3141_v46  ;;  %v3228_v45 = vld [vmem:[#allocation3 + $0x500] ss:$16 sps:$4 sm:$0xff]   ;;  %v3231_v46 = vld [vmem:[#allocation3 + $0x508] ss:$16 sps:$4 sm:$0xff]  }
  0x79   :  { %1702 = vmatprep.subr.bf16.mxu0 %v3146_v47  ;;  %1874 = vmatprep.subr.bf16.mxu1 %v3149_v48  ;;  %v3236_v47 = vld [vmem:[#allocation3 + $0x524] ss:$16 sps:$4 sm:$0xff]   ;;  %v3239_v48 = vld [vmem:[#allocation3 + $0x52c] ss:$16 sps:$4 sm:$0xff]  }
  0x7c   :  { %1703 = vmatpush1.bf16.msra.mxu0 %v3144_v49  ;;  %1875 = vmatpush1.bf16.msra.mxu1 %v3147_v50  ;;  %v3234_v49 = vld [vmem:[#allocation3 + $0x520] ss:$16 sps:$4 sm:$0xff]   ;;  %v3237_v50 = vld [vmem:[#allocation3 + $0x528] ss:$16 sps:$4 sm:$0xff]  }
  0x7d   :  { %1704 = vmatprep.subr.bf16.mxu0 %v3152_v51  ;;  %1876 = vmatprep.subr.bf16.mxu1 %v3155_v52  ;;  %v3242_v51 = vld [vmem:[#allocation3 + $0x544] ss:$16 sps:$4 sm:$0xff]   ;;  %v3245_v52 = vld [vmem:[#allocation3 + $0x54c] ss:$16 sps:$4 sm:$0xff]  }
  0x80   :  { %1705 = vmatpush1.bf16.msra.mxu0 %v3150_v53  ;;  %1877 = vmatpush1.bf16.msra.mxu1 %v3153_v54  ;;  %v3240_v53 = vld [vmem:[#allocation3 + $0x540] ss:$16 sps:$4 sm:$0xff]   ;;  %v3243_v54 = vld [vmem:[#allocation3 + $0x548] ss:$16 sps:$4 sm:$0xff]  }
  0x81   :  { %1706 = vmatprep.subr.bf16.mxu0 %v3158_v55  ;;  %1878 = vmatprep.subr.bf16.mxu1 %v3161_v56  ;;  %v3248_v55 = vld [vmem:[#allocation3 + $0x564] ss:$16 sps:$4 sm:$0xff]   ;;  %v3251_v56 = vld [vmem:[#allocation3 + $0x56c] ss:$16 sps:$4 sm:$0xff]  }
  0x84   :  { %1707 = vmatpush1.bf16.msra.mxu0 %v3156_v57  ;;  %1879 = vmatpush1.bf16.msra.mxu1 %v3159_v58  ;;  %v3246_v57 = vld [vmem:[#allocation3 + $0x560] ss:$16 sps:$4 sm:$0xff]   ;;  %v3249_v58 = vld [vmem:[#allocation3 + $0x568] ss:$16 sps:$4 sm:$0xff]  }
  0x85   :  { %1708 = vmatprep.subr.bf16.mxu0 %v3164_v59  ;;  %1880 = vmatprep.subr.bf16.mxu1 %v3167_v60  ;;  %v3254_v59 = vld [vmem:[#allocation3 + $0x584] ss:$16 sps:$4 sm:$0xff]   ;;  %v3257_v60 = vld [vmem:[#allocation3 + $0x58c] ss:$16 sps:$4 sm:$0xff]  }
  0x88   :  { %1709 = vmatpush1.bf16.msra.mxu0 %v3162_v61  ;;  %1881 = vmatpush1.bf16.msra.mxu1 %v3165_v62  ;;  %v3252_v61 = vld [vmem:[#allocation3 + $0x580] ss:$16 sps:$4 sm:$0xff]   ;;  %v3255_v62 = vld [vmem:[#allocation3 + $0x588] ss:$16 sps:$4 sm:$0xff]  }
  0x89   :  { %1710 = vmatprep.subr.bf16.mxu0 %v3170_v63  ;;  %1882 = vmatprep.subr.bf16.mxu1 %v3173_v0  ;;  %v3260_v63 = vld [vmem:[#allocation3 + $0x5a4] ss:$16 sps:$4 sm:$0xff]   ;;  %v3263_v0 = vld [vmem:[#allocation3 + $0x5ac] ss:$16 sps:$4 sm:$0xff]  }
  0x8c   :  { %1711 = vmatpush1.bf16.msra.mxu0 %v3168_v1  ;;  %1883 = vmatpush1.bf16.msra.mxu1 %v3171_v2  ;;  %v3258_v1 = vld [vmem:[#allocation3 + $0x5a0] ss:$16 sps:$4 sm:$0xff]   ;;  %v3261_v2 = vld [vmem:[#allocation3 + $0x5a8] ss:$16 sps:$4 sm:$0xff]  }
  0x8d   :  { %1712 = vmatprep.subr.bf16.mxu0 %v3176_v3  ;;  %1884 = vmatprep.subr.bf16.mxu1 %v3179_v4  ;;  %v3266_v3 = vld [vmem:[#allocation3 + $0x5c4] ss:$16 sps:$4 sm:$0xff]   ;;  %v3269_v4 = vld [vmem:[#allocation3 + $0x5cc] ss:$16 sps:$4 sm:$0xff]  }
  0x90   :  { %1713 = vmatpush1.bf16.msra.mxu0 %v3174_v5  ;;  %1885 = vmatpush1.bf16.msra.mxu1 %v3177_v6  ;;  %v3264_v5 = vld [vmem:[#allocation3 + $0x5c0] ss:$16 sps:$4 sm:$0xff]   ;;  %v3267_v6 = vld [vmem:[#allocation3 + $0x5c8] ss:$16 sps:$4 sm:$0xff]  }
  0x91   :  { %1725 = vmatprep.subr.bf16.mxu0 %v3182_v7  ;;  %1897 = vmatprep.subr.bf16.mxu1 %v3185_v8  ;;  %v3272_v7 = vld [vmem:[#allocation3 + $0x5e4] ss:$16 sps:$4 sm:$0xff]   ;;  %v3275_v8 = vld [vmem:[#allocation3 + $0x5ec] ss:$16 sps:$4 sm:$0xff]  }
  0x93   :  { %1715 = vmatmul.mubr.bf16.vlgmr.msra.gmra.mrb[0].mxu0 %v2579_v9  ;;  %1887 = vmatmul.mubr.bf16.vlgmr.msra.gmra.mrb[0].mxu1 %v2579_v9  ;;  %v3270_v9 = vld [vmem:[#allocation3 + $0x5e0] ss:$16 sps:$4 sm:$0xff]  }
  0x94   :  { %1726 = vmatpush1.bf16.msra.mxu0 %v3180_v10  ;;  %1898 = vmatpush1.bf16.msra.mxu1 %v3183_v11  ;;  %v3273_v10 = vld [vmem:[#allocation3 + $0x5e8] ss:$16 sps:$4 sm:$0xff]   ;;  %v3278_v11 = vld [vmem:[#allocation3 + $0x604] ss:$16 sps:$4 sm:$0xff]  }
  0x95   :  { %1727 = vmatprep.subr.bf16.mxu0 %v3188_v12  ;;  %1899 = vmatprep.subr.bf16.mxu1 %v3191_v13  ;;  %v3281_v12 = vld [vmem:[#allocation3 + $0x60c] ss:$16 sps:$4 sm:$0xff]   ;;  %v3276_v13 = vld [vmem:[#allocation3 + $0x600] ss:$16 sps:$4 sm:$0xff]  }
  0x96   :  { %1757 = vmatprep.mubr.bf16.mxu0 %v2582_v16  ;;  %1929 = vmatprep.mubr.bf16.mxu1 %v2582_v16  ;;  %v3279_v16 = vld [vmem:[#allocation3 + $0x608] ss:$16 sps:$4 sm:$0xff]  }
  0x98   :  { %1728 = vmatpush1.bf16.msra.mxu0 %v3186_v17  ;;  %1900 = vmatpush1.bf16.msra.mxu1 %v3189_v18  ;;  %v3540_v17 = vld [vmem:[%s3743_s0 + $0x18] sm:$0xff]  ;;  %v2581_v18 = vcombine.low %v3528_v14, %v3533_v15  ;;  %v3290_v14 = vld [vmem:[#allocation3 + $0x644] ss:$16 sps:$4 sm:$0xff]  }
  0x99   :  { %1729 = vmatprep.subr.bf16.mxu0 %v3194_v19  ;;  %1901 = vmatprep.subr.bf16.mxu1 %v3197_v20  ;;  %v3547_v19 = vld [vmem:[%s3743_s0 + $0x38] sm:$0xff]  ;;  %v3284_v20 = vld [vmem:[#allocation3 + $0x624] ss:$16 sps:$4 sm:$0xff]  }
  0x9a   :  { %v3293_v15 = vld [vmem:[#allocation3 + $0x64c] ss:$16 sps:$4 sm:$0xff]  }
  0x9c   :  { %1730 = vmatpush1.bf16.msra.mxu0 %v3192_v21  ;;  %1902 = vmatpush1.bf16.msra.mxu1 %v3195_v22  ;;  %v3287_v21 = vld [vmem:[#allocation3 + $0x62c] ss:$16 sps:$4 sm:$0xff]   ;;  %v3282_v22 = vld [vmem:[#allocation3 + $0x620] ss:$16 sps:$4 sm:$0xff]  }
  0x9d   :  { %1731 = vmatprep.subr.bf16.mxu0 %v3200_v23  ;;  %1903 = vmatprep.subr.bf16.mxu1 %v3203_v24  ;;  %v2584_v23 = vcombine.high %v3540_v17, %v3547_v19  ;;  %v3285_v24 = vld [vmem:[#allocation3 + $0x628] ss:$16 sps:$4 sm:$0xff]  }
  0xa0   :  { %1732 = vmatpush1.bf16.msra.mxu0 %v3198_v25  ;;  %1904 = vmatpush1.bf16.msra.mxu1 %v3201_v26  ;;  %v3288_v25 = vld [vmem:[#allocation3 + $0x640] ss:$16 sps:$4 sm:$0xff]   ;;  %v3291_v26 = vld [vmem:[#allocation3 + $0x648] ss:$16 sps:$4 sm:$0xff]  }
  0xa1   :  { %1733 = vmatprep.subr.bf16.mxu0 %v3206_v27  ;;  %1905 = vmatprep.subr.bf16.mxu1 %v3209_v28  ;;  %v3296_v27 = vld [vmem:[#allocation3 + $0x664] ss:$16 sps:$4 sm:$0xff]   ;;  %v3299_v28 = vld [vmem:[#allocation3 + $0x66c] ss:$16 sps:$4 sm:$0xff]  }
  0xa4   :  { %1734 = vmatpush1.bf16.msra.mxu0 %v3204_v29  ;;  %1906 = vmatpush1.bf16.msra.mxu1 %v3207_v30  ;;  %v3294_v29 = vld [vmem:[#allocation3 + $0x660] ss:$16 sps:$4 sm:$0xff]   ;;  %v3297_v30 = vld [vmem:[#allocation3 + $0x668] ss:$16 sps:$4 sm:$0xff]  }
  0xa5   :  { %1735 = vmatprep.subr.bf16.mxu0 %v3212_v31  ;;  %1907 = vmatprep.subr.bf16.mxu1 %v3215_v32  ;;  %v3302_v31 = vld [vmem:[#allocation3 + $0x684] ss:$16 sps:$4 sm:$0xff]   ;;  %v3305_v32 = vld [vmem:[#allocation3 + $0x68c] ss:$16 sps:$4 sm:$0xff]  }
  0xa8   :  { %1736 = vmatpush1.bf16.msra.mxu0 %v3210_v33  ;;  %1908 = vmatpush1.bf16.msra.mxu1 %v3213_v34  ;;  %v3300_v33 = vld [vmem:[#allocation3 + $0x680] ss:$16 sps:$4 sm:$0xff]   ;;  %v3303_v34 = vld [vmem:[#allocation3 + $0x688] ss:$16 sps:$4 sm:$0xff]  }
  0xa9   :  { %1737 = vmatprep.subr.bf16.mxu0 %v3218_v35  ;;  %1909 = vmatprep.subr.bf16.mxu1 %v3221_v36  ;;  %v3308_v35 = vld [vmem:[#allocation3 + $0x6a4] ss:$16 sps:$4 sm:$0xff]   ;;  %v3311_v36 = vld [vmem:[#allocation3 + $0x6ac] ss:$16 sps:$4 sm:$0xff]  }
  0xac   :  { %1738 = vmatpush1.bf16.msra.mxu0 %v3216_v37  ;;  %1910 = vmatpush1.bf16.msra.mxu1 %v3219_v38  ;;  %v3306_v37 = vld [vmem:[#allocation3 + $0x6a0] ss:$16 sps:$4 sm:$0xff]   ;;  %v3309_v38 = vld [vmem:[#allocation3 + $0x6a8] ss:$16 sps:$4 sm:$0xff]  }
  0xad   :  { %1739 = vmatprep.subr.bf16.mxu0 %v3224_v39  ;;  %1911 = vmatprep.subr.bf16.mxu1 %v3227_v40  ;;  %v3314_v39 = vld [vmem:[#allocation3 + $0x6c4] ss:$16 sps:$4 sm:$0xff]   ;;  %v3317_v40 = vld [vmem:[#allocation3 + $0x6cc] ss:$16 sps:$4 sm:$0xff]  }
  0xb0   :  { %1740 = vmatpush1.bf16.msra.mxu0 %v3222_v41  ;;  %1912 = vmatpush1.bf16.msra.mxu1 %v3225_v42  ;;  %v3312_v41 = vld [vmem:[#allocation3 + $0x6c0] ss:$16 sps:$4 sm:$0xff]   ;;  %v3315_v42 = vld [vmem:[#allocation3 + $0x6c8] ss:$16 sps:$4 sm:$0xff]  }
  0xb1   :  { %1741 = vmatprep.subr.bf16.mxu0 %v3230_v43  ;;  %1913 = vmatprep.subr.bf16.mxu1 %v3233_v44  ;;  %v3320_v43 = vld [vmem:[#allocation3 + $0x6e4] ss:$16 sps:$4 sm:$0xff]   ;;  %v3323_v44 = vld [vmem:[#allocation3 + $0x6ec] ss:$16 sps:$4 sm:$0xff]  }
  0xb4   :  { %1742 = vmatpush1.bf16.msra.mxu0 %v3228_v45  ;;  %1914 = vmatpush1.bf16.msra.mxu1 %v3231_v46  ;;  %v3318_v45 = vld [vmem:[#allocation3 + $0x6e0] ss:$16 sps:$4 sm:$0xff]   ;;  %v3321_v46 = vld [vmem:[#allocation3 + $0x6e8] ss:$16 sps:$4 sm:$0xff]  }
  0xb5   :  { %1743 = vmatprep.subr.bf16.mxu0 %v3236_v47  ;;  %1915 = vmatprep.subr.bf16.mxu1 %v3239_v48  ;;  %v3326_v47 = vld [vmem:[#allocation3 + $0x704] ss:$16 sps:$4 sm:$0xff]   ;;  %v3329_v48 = vld [vmem:[#allocation3 + $0x70c] ss:$16 sps:$4 sm:$0xff]  }
  0xb8   :  { %1744 = vmatpush1.bf16.msra.mxu0 %v3234_v49  ;;  %1916 = vmatpush1.bf16.msra.mxu1 %v3237_v50  ;;  %v3324_v49 = vld [vmem:[#allocation3 + $0x700] ss:$16 sps:$4 sm:$0xff]   ;;  %v3327_v50 = vld [vmem:[#allocation3 + $0x708] ss:$16 sps:$4 sm:$0xff]  }
  0xb9   :  { %1745 = vmatprep.subr.bf16.mxu0 %v3242_v51  ;;  %1917 = vmatprep.subr.bf16.mxu1 %v3245_v52  ;;  %v3332_v51 = vld [vmem:[#allocation3 + $0x724] ss:$16 sps:$4 sm:$0xff]   ;;  %v3335_v52 = vld [vmem:[#allocation3 + $0x72c] ss:$16 sps:$4 sm:$0xff]  }
  0xbc   :  { %1746 = vmatpush1.bf16.msra.mxu0 %v3240_v53  ;;  %1918 = vmatpush1.bf16.msra.mxu1 %v3243_v54  ;;  %v3330_v53 = vld [vmem:[#allocation3 + $0x720] ss:$16 sps:$4 sm:$0xff]   ;;  %v3333_v54 = vld [vmem:[#allocation3 + $0x728] ss:$16 sps:$4 sm:$0xff]  }
  0xbd   :  { %1747 = vmatprep.subr.bf16.mxu0 %v3248_v55  ;;  %1919 = vmatprep.subr.bf16.mxu1 %v3251_v56  ;;  %v3338_v55 = vld [vmem:[#allocation3 + $0x744] ss:$16 sps:$4 sm:$0xff]   ;;  %v3341_v56 = vld [vmem:[#allocation3 + $0x74c] ss:$16 sps:$4 sm:$0xff]  }
  0xc0   :  { %1748 = vmatpush1.bf16.msra.mxu0 %v3246_v57  ;;  %1920 = vmatpush1.bf16.msra.mxu1 %v3249_v58  ;;  %v3336_v57 = vld [vmem:[#allocation3 + $0x740] ss:$16 sps:$4 sm:$0xff]   ;;  %v3339_v58 = vld [vmem:[#allocation3 + $0x748] ss:$16 sps:$4 sm:$0xff]  }
  0xc1   :  { %1749 = vmatprep.subr.bf16.mxu0 %v3254_v59  ;;  %1921 = vmatprep.subr.bf16.mxu1 %v3257_v60  ;;  %v3344_v59 = vld [vmem:[#allocation3 + $0x764] ss:$16 sps:$4 sm:$0xff]   ;;  %v3347_v60 = vld [vmem:[#allocation3 + $0x76c] ss:$16 sps:$4 sm:$0xff]  }
  0xc4   :  { %1750 = vmatpush1.bf16.msra.mxu0 %v3252_v61  ;;  %1922 = vmatpush1.bf16.msra.mxu1 %v3255_v62  ;;  %v3342_v61 = vld [vmem:[#allocation3 + $0x760] ss:$16 sps:$4 sm:$0xff]   ;;  %v3345_v62 = vld [vmem:[#allocation3 + $0x768] ss:$16 sps:$4 sm:$0xff]  }
  0xc5   :  { %1751 = vmatprep.subr.bf16.mxu0 %v3260_v63  ;;  %1923 = vmatprep.subr.bf16.mxu1 %v3263_v0  ;;  %v3350_v63 = vld [vmem:[#allocation3 + $0x784] ss:$16 sps:$4 sm:$0xff]   ;;  %v3353_v0 = vld [vmem:[#allocation3 + $0x78c] ss:$16 sps:$4 sm:$0xff]  }
  0xc8   :  { %1752 = vmatpush1.bf16.msra.mxu0 %v3258_v1  ;;  %1924 = vmatpush1.bf16.msra.mxu1 %v3261_v2  ;;  %v3348_v1 = vld [vmem:[#allocation3 + $0x780] ss:$16 sps:$4 sm:$0xff]   ;;  %v3351_v2 = vld [vmem:[#allocation3 + $0x788] ss:$16 sps:$4 sm:$0xff]  }
  0xc9   :  { %1753 = vmatprep.subr.bf16.mxu0 %v3266_v3  ;;  %1925 = vmatprep.subr.bf16.mxu1 %v3269_v4  ;;  %v3356_v3 = vld [vmem:[#allocation3 + $0x7a4] ss:$16 sps:$4 sm:$0xff]   ;;  %v3359_v4 = vld [vmem:[#allocation3 + $0x7ac] ss:$16 sps:$4 sm:$0xff]  }
  0xcc   :  { %1754 = vmatpush1.bf16.msra.mxu0 %v3264_v5  ;;  %1926 = vmatpush1.bf16.msra.mxu1 %v3267_v6  ;;  %v3354_v5 = vld [vmem:[#allocation3 + $0x7a0] ss:$16 sps:$4 sm:$0xff]   ;;  %v3357_v6 = vld [vmem:[#allocation3 + $0x7a8] ss:$16 sps:$4 sm:$0xff]  }
  0xcd   :  { %1755 = vmatprep.subr.bf16.mxu0 %v3272_v7  ;;  %1927 = vmatprep.subr.bf16.mxu1 %v3275_v8  ;;  %v3362_v7 = vld [vmem:[#allocation3 + $0x7c4] ss:$16 sps:$4 sm:$0xff]   ;;  %v3365_v8 = vld [vmem:[#allocation3 + $0x7cc] ss:$16 sps:$4 sm:$0xff]  }
  0xd0   :  { %1756 = vmatpush1.bf16.msra.mxu0 %v3270_v9  ;;  %1928 = vmatpush1.bf16.msra.mxu1 %v3273_v10  ;;  %v3360_v9 = vld [vmem:[#allocation3 + $0x7c0] ss:$16 sps:$4 sm:$0xff]   ;;  %v3363_v10 = vld [vmem:[#allocation3 + $0x7c8] ss:$16 sps:$4 sm:$0xff]  }
  0xd1   :  { %1768 = vmatprep.subr.bf16.mxu0 %v3278_v11  ;;  %1940 = vmatprep.subr.bf16.mxu1 %v3281_v12  ;;  %v3368_v11 = vld [vmem:[#allocation3 + $0x7e4] ss:$16 sps:$4 sm:$0xff]   ;;  %v3371_v12 = vld [vmem:[#allocation3 + $0x7ec] ss:$16 sps:$4 sm:$0xff]  }
  0xd3   :  { %1758 = vmatmul.mubr.bf16.vlgmr.msra.gmra.mrb[0].mxu0 %v2581_v18  ;;  %1930 = vmatmul.mubr.bf16.vlgmr.msra.gmra.mrb[0].mxu1 %v2581_v18  ;;  %v3372_v18 = vld [vmem:[%s3745_s2 + $0x40] sm:$0xff]  }
  0xd4   :  { %1769 = vmatpush1.bf16.msra.mxu0 %v3276_v13  ;;  %1941 = vmatpush1.bf16.msra.mxu1 %v3279_v16  ;;  %v3366_v13 = vld [vmem:[#allocation3 + $0x7e0] ss:$16 sps:$4 sm:$0xff]   ;;  %v3369_v16 = vld [vmem:[#allocation3 + $0x7e8] ss:$16 sps:$4 sm:$0xff]  }
  0xd5   :  { %1770 = vmatprep.subr.bf16.mxu0 %v3284_v20  ;;  %1942 = vmatprep.subr.bf16.mxu1 %v3287_v21  ;;  %v3373_v20 = vld [vmem:[%s3745_s2 + $0xc0] sm:$0xff]   ;;  %v2583_v21 = vcombine.low %v3540_v17, %v3547_v19  ;;  %v3377_v17 = vld [vmem:[%s3745_s2 + $0xc8] sm:$0xff]  }
  0xd6   :  { %1800 = vmatprep.mubr.bf16.mxu0 %v2584_v23  ;;  %1972 = vmatprep.mubr.bf16.mxu1 %v2584_v23  ;;  %v3375_v23 = vld [vmem:[%s3745_s2 + $0x80] sm:$0xff]   ;;  %v3378_v19 = vld [vmem:[%s3745_s2 + $0x8] sm:$0xff]  }
  0xd8   :  { %1771 = vmatpush1.bf16.msra.mxu0 %v3282_v22  ;;  %1943 = vmatpush1.bf16.msra.mxu1 %v3285_v24  ;;  %v3374_v22 = vld [vmem:[%s3745_s2] sm:$0xff]   ;;  %v3376_v24 = vld [vmem:[%s3745_s2 + $0x48] sm:$0xff]  }
  0xd9   :  { %1772 = vmatprep.subr.bf16.mxu0 %v3290_v14  ;;  %1944 = vmatprep.subr.bf16.mxu1 %v3293_v15  ;;  %v3379_v14 = vld [vmem:[%s3745_s2 + $0x88] sm:$0xff]   ;;  %v3380_v15 = vld [vmem:[%s3745_s2 + $0x50] sm:$0xff]  }
  0xdc   :  { %1773 = vmatpush1.bf16.msra.mxu0 %v3288_v25  ;;  %1945 = vmatpush1.bf16.msra.mxu1 %v3291_v26  ;;  %v3381_v25 = vld [vmem:[%s3745_s2 + $0xd0] sm:$0xff]  }
  0xdd   :  { %1774 = vmatprep.subr.bf16.mxu0 %v3296_v27  ;;  %1946 = vmatprep.subr.bf16.mxu1 %v3299_v28  ;;  %v3382_v26 = vld [vmem:[%s3745_s2 + $0x10] sm:$0xff]   ;;  %v3384_v28 = vld [vmem:[%s3745_s2 + $0x58] sm:$0xff]  }
  0xde   :  { %v3383_v27 = vld [vmem:[%s3745_s2 + $0x90] sm:$0xff]  }
  0xe0   :  { %1775 = vmatpush1.bf16.msra.mxu0 %v3294_v29  ;;  %1947 = vmatpush1.bf16.msra.mxu1 %v3297_v30  ;;  %v3385_v29 = vld [vmem:[%s3745_s2 + $0xd8] sm:$0xff]  }
  0xe1   :  { %1776 = vmatprep.subr.bf16.mxu0 %v3302_v31  ;;  %1948 = vmatprep.subr.bf16.mxu1 %v3305_v32  ;;  %v3386_v30 = vld [vmem:[%s3745_s2 + $0x18] sm:$0xff]   ;;  %v3388_v32 = vld [vmem:[%s3745_s2 + $0x60] sm:$0xff]  }
  0xe2   :  { %v3387_v31 = vld [vmem:[%s3745_s2 + $0x98] sm:$0xff]  }
  0xe4   :  { %1777 = vmatpush1.bf16.msra.mxu0 %v3300_v33  ;;  %1949 = vmatpush1.bf16.msra.mxu1 %v3303_v34  ;;  %v3389_v33 = vld [vmem:[%s3745_s2 + $0xe0] sm:$0xff]  }
  0xe5   :  { %1778 = vmatprep.subr.bf16.mxu0 %v3308_v35  ;;  %1950 = vmatprep.subr.bf16.mxu1 %v3311_v36  ;;  %v3390_v34 = vld [vmem:[%s3745_s2 + $0x20] sm:$0xff]   ;;  %v3392_v36 = vld [vmem:[%s3745_s2 + $0x68] sm:$0xff]  }
  0xe6   :  { %v3391_v35 = vld [vmem:[%s3745_s2 + $0xa0] sm:$0xff]  }
  0xe8   :  { %1779 = vmatpush1.bf16.msra.mxu0 %v3306_v37  ;;  %1951 = vmatpush1.bf16.msra.mxu1 %v3309_v38  ;;  %v3393_v37 = vld [vmem:[%s3745_s2 + $0xe8] sm:$0xff]  }
  0xe9   :  { %1780 = vmatprep.subr.bf16.mxu0 %v3314_v39  ;;  %1952 = vmatprep.subr.bf16.mxu1 %v3317_v40  ;;  %v3394_v38 = vld [vmem:[%s3745_s2 + $0x28] sm:$0xff]   ;;  %v3396_v40 = vld [vmem:[%s3745_s2 + $0x70] sm:$0xff]  }
  0xea   :  { %v3395_v39 = vld [vmem:[%s3745_s2 + $0xa8] sm:$0xff]  }
  0xec   :  { %1781 = vmatpush1.bf16.msra.mxu0 %v3312_v41  ;;  %1953 = vmatpush1.bf16.msra.mxu1 %v3315_v42  ;;  %v3397_v41 = vld [vmem:[%s3745_s2 + $0xf0] sm:$0xff]  }
  0xed   :  { %1782 = vmatprep.subr.bf16.mxu0 %v3320_v43  ;;  %1954 = vmatprep.subr.bf16.mxu1 %v3323_v44  ;;  %v3398_v42 = vld [vmem:[%s3745_s2 + $0x30] sm:$0xff]   ;;  %v3400_v44 = vld [vmem:[%s3745_s2 + $0x78] sm:$0xff]  }
  0xee   :  { %v3399_v43 = vld [vmem:[%s3745_s2 + $0xb0] sm:$0xff]  }
  0xf0   :  { %1783 = vmatpush1.bf16.msra.mxu0 %v3318_v45  ;;  %1955 = vmatpush1.bf16.msra.mxu1 %v3321_v46  ;;  %v3401_v45 = vld [vmem:[%s3745_s2 + $0xf8] sm:$0xff]  }
  0xf1   :  { %1784 = vmatprep.subr.bf16.mxu0 %v3326_v47  ;;  %1956 = vmatprep.subr.bf16.mxu1 %v3329_v48  ;;  %v3402_v46 = vld [vmem:[%s3745_s2 + $0x38] sm:$0xff]   ;;  %v2017_v48 = vlaneseq }
  0xf2   :  { %v3403_v47 = vld [vmem:[%s3745_s2 + $0xb8] sm:$0xff]  }
  0xf4   :  { %1785 = vmatpush1.bf16.msra.mxu0 %v3324_v49  ;;  %1957 = vmatpush1.bf16.msra.mxu1 %v3327_v50  ;;  %v2018_v49 = vshrl.u32 %v2017_v48, 7 }
  0xf5   :  { %1786 = vmatprep.subr.bf16.mxu0 %v3332_v51  ;;  %1958 = vmatprep.subr.bf16.mxu1 %v3335_v52  ;;  %v2002_v52 = vld [vmem:[%s3747_s4] ss:$8 sm:$0xf] }
  0xf6   :  { %v2019_v50 = vsub.s32 0, %v2018_v49  ;;  %v2027_v51 = vsub.s32 2, %v2018_v49 }
  0xf8   :  { %1787 = vmatpush1.bf16.msra.mxu0 %v3330_v53  ;;  %1959 = vmatpush1.bf16.msra.mxu1 %v3333_v54  ;;  %v2023_v53 = vsub.s32 1, %v2018_v49  ;;  %v2031_v54 = vsub.s32 3, %v2018_v49 }
  0xf9   :  { %1788 = vmatprep.subr.bf16.mxu0 %v3338_v55  ;;  %1960 = vmatprep.subr.bf16.mxu1 %v3341_v56  ;;  %v2020_v55 = vrot.slane %v2002_v52, %v2019_v50  ;;  %v2028_v56 = vrot.slane %v2002_v52, %v2027_v51 }
  0xfc   :  { %1789 = vmatpush1.bf16.msra.mxu0 %v3336_v57  ;;  %1961 = vmatpush1.bf16.msra.mxu1 %v3339_v58 }
  0xfd   :  { %1790 = vmatprep.subr.bf16.mxu0 %v3344_v59  ;;  %1962 = vmatprep.subr.bf16.mxu1 %v3347_v60  ;;  %v2024_v59 = vrot.slane %v2002_v52, %v2023_v53  ;;  %v2032_v60 = vrot.slane %v2002_v52, %v2031_v54  ;;  %v2004_v54 = vld [vmem:[%s3747_s4 + $0x2] ss:$0 sm:$0xff] }
 0x100   :  { %1791 = vmatpush1.bf16.msra.mxu0 %v3342_v61  ;;  %1963 = vmatpush1.bf16.msra.mxu1 %v3345_v62 }
 0x101   :  { %1792 = vmatprep.subr.bf16.mxu0 %v3350_v63  ;;  %1964 = vmatprep.subr.bf16.mxu1 %v3353_v0 }
 0x104   :  { %1793 = vmatpush1.bf16.msra.mxu0 %v3348_v1  ;;  %1965 = vmatpush1.bf16.msra.mxu1 %v3351_v2 }
 0x105   :  { %1794 = vmatprep.subr.bf16.mxu0 %v3356_v3  ;;  %1966 = vmatprep.subr.bf16.mxu1 %v3359_v4 }
 0x108   :  { %1795 = vmatpush1.bf16.msra.mxu0 %v3354_v5  ;;  %1967 = vmatpush1.bf16.msra.mxu1 %v3357_v6 }
 0x109   :  { %1796 = vmatprep.subr.bf16.mxu0 %v3362_v7  ;;  %1968 = vmatprep.subr.bf16.mxu1 %v3365_v8 }
 0x10c   :  { %1797 = vmatpush1.bf16.msra.mxu0 %v3360_v9  ;;  %1969 = vmatpush1.bf16.msra.mxu1 %v3363_v10 }
 0x10d   :  { %1798 = vmatprep.subr.bf16.mxu0 %v3368_v11  ;;  %1970 = vmatprep.subr.bf16.mxu1 %v3371_v12 }
 0x110   :  { %1799 = vmatpush1.bf16.msra.mxu0 %v3366_v13  ;;  %1971 = vmatpush1.bf16.msra.mxu1 %v3369_v16 }
 0x111   :  { %2881 = vmatprep.subr.bf16.mxu0 %v3372_v18  ;;  %2903 = vmatprep.subr.bf16.mxu1 %v3373_v20  ;;  %v3459_v18 = vmov 8   ;;  %v3460_v20 = vmov 7  }
 0x112   :  { %2986 = vset.pattern.permute.xlu1 %v3459_v18  ;;  %2985 = vset.pattern.permute.xlu0 %v3460_v20 }
 0x113   :  { %1801 = vmatmul.mubr.bf16.vlgmr.msra.gmra.mrb[0].mxu0 %v2583_v21  ;;  %1973 = vmatmul.mubr.bf16.vlgmr.msra.gmra.mrb[0].mxu1 %v2583_v21  ;;  %v3404_v21 = vld [vmem:[%s3746_s3] sm:$0xff]  }
 0x114   :  { %2882 = vmatpush3.bf16.msra.mxu0 %v3374_v22  ;;  %2904 = vmatpush3.bf16.msra.mxu1 %v3375_v23  ;;  %v3461_v22 = vmov 0.0   ;;  %v3405_v23 = vld [vmem:[%s3746_s3 + $0x8] sm:$0xff]  }
 0x115   :  { %2883 = vmatprep.subr.bf16.mxu0 %v3376_v24  ;;  %2905 = vmatprep.subr.bf16.mxu1 %v3377_v17  ;;  %v3406_v24 = vld [vmem:[%s3746_s3 + $0x10] sm:$0xff]   ;;  %v3407_v17 = vld [vmem:[%s3746_s3 + $0x18] sm:$0xff]  }
 0x118   :  { %2884 = vmatpush3.bf16.msra.mxu0 %v3378_v19  ;;  %2906 = vmatpush3.bf16.msra.mxu1 %v3379_v14  ;;  %v3408_v19 = vld [vmem:[%s3746_s3 + $0x20] sm:$0xff]  }
 0x119   :  { %2885 = vmatprep.subr.bf16.mxu0 %v3380_v15  ;;  %2907 = vmatprep.subr.bf16.mxu1 %v3381_v25  ;;  %v2003_v25 = vld [vmem:[%s3747_s4 + $0x1] ss:$0 sm:$0xff] }
 0x11c   :  { %2886 = vmatpush3.bf16.msra.mxu0 %v3382_v26  ;;  %2908 = vmatpush3.bf16.msra.mxu1 %v3383_v27 }
 0x11d   :  { %2887 = vmatprep.subr.bf16.mxu0 %v3384_v28  ;;  %2909 = vmatprep.subr.bf16.mxu1 %v3385_v29 }
 0x120   :  { %2888 = vmatpush3.bf16.msra.mxu0 %v3386_v30  ;;  %2910 = vmatpush3.bf16.msra.mxu1 %v3387_v31 }
 0x121   :  { %2889 = vmatprep.subr.bf16.mxu0 %v3388_v32  ;;  %2911 = vmatprep.subr.bf16.mxu1 %v3389_v33 }
 0x124   :  { %2890 = vmatpush3.bf16.msra.mxu0 %v3390_v34  ;;  %2912 = vmatpush3.bf16.msra.mxu1 %v3391_v35 }
 0x125   :  { %2891 = vmatprep.subr.bf16.mxu0 %v3392_v36  ;;  %2913 = vmatprep.subr.bf16.mxu1 %v3393_v37 }
 0x128   :  { %2892 = vmatpush3.bf16.msra.mxu0 %v3394_v38  ;;  %2914 = vmatpush3.bf16.msra.mxu1 %v3395_v39 }
 0x129   :  { %2893 = vmatprep.subr.bf16.mxu0 %v3396_v40  ;;  %2915 = vmatprep.subr.bf16.mxu1 %v3397_v41  ;;  %v3409_v40 = vld [vmem:[%s3746_s3 + $0x28] sm:$0xff]   ;;  %v3410_v41 = vld [vmem:[%s3746_s3 + $0x30] sm:$0xff]  }
 0x12c   :  { %2894 = vmatpush3.bf16.msra.mxu0 %v3398_v42  ;;  %2916 = vmatpush3.bf16.msra.mxu1 %v3399_v43  ;;  %v3411_v42 = vld [vmem:[%s3746_s3 + $0x38] sm:$0xff]   ;;  %v3689_v43 = vand.u32 127, %v2017_v48  ;;  %v2006_v48 = vld [vmem:[%s3747_s4 + $0x4] ss:$0 sm:$0xff] }
 0x12d   :  { %2895 = vmatprep.subr.bf16.mxu0 %v3400_v44  ;;  %2917 = vmatprep.subr.bf16.mxu1 %v3401_v45 }
 0x12e   :  { %vm2403_vm1 = vcmp.ge.s32.totalorder %v3689_v43, 5  ;;  %vm2404_vm2 = vcmp.lt.s32.totalorder %v3689_v43, 7  ;;  %vm2563_vm4 = vcmp.lt.s32.totalorder %v3689_v43, 9  ;;  %vm2562_vm5 = vcmp.lt.s32.totalorder %v3689_v43, 5 }
 0x12f   :  { %vm3695_vm3 = vmand %vm2403_vm1, %vm2404_vm2 }
 0x130   :  { %2896 = vmatpush3.bf16.msra.mxu0 %v3402_v46  ;;  %2918 = vmatpush3.bf16.msra.mxu1 %v3403_v47  ;;  %v2007_v47 = vld [vmem:[%s3747_s4 + $0x5] ss:$0 sm:$0xff] }
 0x131   :  { %2934 = vmatprep.subr.bf16.mxu0 %v3461_v22 }
 0x1e6   :  { %v1802_v57 = vpop.f32.mrb[0].mxu0  ;;  %v1974_v58 = vpop.f32.mrb[0].mxu1 }
 0x1e7   :  { %v1804_v61 = vpop.f32.mrb[1].mxu0  ;;  %v1976_v62 = vpop.f32.mrb[1].mxu1  ;;  %v2037_v1 = vadd.f32 %v2020_v55, %v1802_v57  ;;  %v2039_v2 = vadd.f32 %v2028_v56, %v1974_v58 }
 0x1e8   :  { %v1806_v63 = vpop.f32.mrb[2].mxu0  ;;  %v1978_v0 = vpop.f32.mrb[2].mxu1  ;;  %v2038_v7 = vadd.f32 %v2024_v59, %v1804_v61  ;;  %v2040_v8 = vadd.f32 %v2032_v60, %v1976_v62 }
 0x1e9   :  { %v2041_v3 = vadd.f32 %v2020_v55, %v1806_v63  ;;  %v2043_v4 = vadd.f32 %v2028_v56, %v1978_v0  ;;  %v1808_v5 = vpop.f32.mrb[3].mxu0  ;;  %v1980_v6 = vpop.f32.mrb[3].mxu1 }
 0x1ea   :  { %v2042_v9 = vadd.f32 %v2024_v59, %v1808_v5  ;;  %v2044_v10 = vadd.f32 %v2032_v60, %v1980_v6 }
 0x1eb   :  { %v2045_v11 = vpack.c.bf16 %v2041_v3, %v2037_v1  ;;  %v2047_v12 = vpack.c.bf16 %v2043_v4, %v2039_v2 }
 0x1ec   :  { %v2046_v13 = vpack.c.bf16 %v2042_v9, %v2038_v7  ;;  %v2048_v16 = vpack.c.bf16 %v2044_v10, %v2040_v8 }
 0x1ee   :  { %2337 = vmatprep.mubr.bf16.mxu0 %v2046_v13  ;;  %2378 = vmatprep.mubr.bf16.mxu1 %v2048_v16 }
 0x1ef   :  { %2338 = vmatmul.mubr.bf16.vlgmr.msra.gmra.mrb[4].mxu0 %v2045_v11  ;;  %2379 = vmatmul.mubr.bf16.vlgmr.msra.gmra.mrb[4].mxu1 %v2047_v12 }
 0x1f0   :  { %2935 = vmatpush3.bf16.msra.mxu0 %v3404_v21  ;;  %2950 = vmatprep.mubr.msk.bf16.mxu0 %vm3462_vm0, %v3461_v22 }
 0x1f1   :  { %2936 = vmatprep.subr.bf16.mxu0 %v3461_v22 }
 0x1f4   :  { %2937 = vmatpush3.bf16.msra.mxu0 %v3405_v23 }
 0x1f5   :  { %2938 = vmatprep.subr.bf16.mxu0 %v3461_v22 }
 0x1f8   :  { %2939 = vmatpush3.bf16.msra.mxu0 %v3406_v24 }
 0x1f9   :  { %2940 = vmatprep.subr.bf16.mxu0 %v3461_v22 }
 0x1fc   :  { %2941 = vmatpush3.bf16.msra.mxu0 %v3407_v17  ;;  %v2005_v17 = vld [vmem:[%s3747_s4 + $0x3] ss:$0 sm:$0xff] }
 0x1fd   :  { %2942 = vmatprep.subr.bf16.mxu0 %v3461_v22 }
 0x200   :  { %2943 = vmatpush3.bf16.msra.mxu0 %v3408_v19 }
 0x201   :  { %2944 = vmatprep.subr.bf16.mxu0 %v3461_v22 }
 0x204   :  { %2945 = vmatpush3.bf16.msra.mxu0 %v3409_v40 }
 0x205   :  { %2946 = vmatprep.subr.bf16.mxu0 %v3461_v22 }
 0x208   :  { %2947 = vmatpush3.bf16.msra.mxu0 %v3410_v41 }
 0x209   :  { %2948 = vmatprep.subr.bf16.mxu0 %v3461_v22 }
 0x20c   :  { %2949 = vmatpush3.bf16.msra.mxu0 %v3411_v42 }
 0x2c2   :  { %v2897_v14 = vpop.f32.mrb[4].mxu0  ;;  %v2919_v15 = vpop.f32.mrb[4].mxu1 }
 0x2c3   :  { %v2898_v26 = vpop.f32.mrb[5].mxu0  ;;  %v2920_v27 = vpop.f32.mrb[5].mxu1 }
 0x2c4   :  { %v2899_v28 = vadd.f32 %v2898_v26, %v2897_v14  ;;  %v2921_v29 = vadd.f32 %v2920_v27, %v2919_v15  ;;  %v2900_v30 = vpop.f32.mrb[6].mxu0  ;;  %v2922_v31 = vpop.f32.mrb[6].mxu1 }
 0x2c5   :  { %v2901_v32 = vpop.f32.mrb[7].mxu0  ;;  %v2923_v33 = vpop.f32.mrb[7].mxu1 }
 0x2c6   :  { %v2340_v34 = vadd.f32 %v2899_v28, %v2003_v25  ;;  %v2902_v35 = vadd.f32 %v2901_v32, %v2900_v30  ;;  %v2924_v36 = vadd.f32 %v2923_v33, %v2922_v31 }
 0x2c8   :  { %v3671_v37 = vadd.f32 %v2921_v29, %v2340_v34  ;;  %v2343_v38 = vadd.f32 %v2902_v35, %v2003_v25 }
 0x2ca   :  { %v3673_v39 = vadd.f32 %v2924_v36, %v2343_v38  ;;  %2441 = vperm.xlu1 %2986, %v3671_v37   ;;  %2430 = vperm.xlu0 %2985, %v3671_v37   ;;  %v2406_v45 = vsel %vm3695_vm3, %v3671_v37, -1e+30  ;;  %v2389_v11 = vsub.f32 0.0, %v3671_v37 }
 0x2cc   :  { %v2407_v46 = vsel %vm3695_vm3, %v3673_v39, -1e+30  ;;  %v2390_v12 = vsub.f32 0.0, %v3673_v39  ;;  %v2391_v13 = vmul.f32 1.442695, %v2389_v11 }
 0x2ce   :  { %2445 = vperm.xlu1 %2986, %v3673_v39   ;;  %2435 = vperm.xlu0 %2985, %v3673_v39   ;;  %v2393_v16 = vmul.f32 1.442695, %v2390_v12 }
 0x2d2   :  { %2987 = vset.pattern.permute.xlu0 %v3459_v18 }
 0x2ed   :  { %2408 = vmax.xlane.f32.xlu0 %v2406_v45 }
 0x2f2   :  { %2410 = vmax.xlane.f32.xlu1 %v2407_v46 }
 0x349   :  { %v2442_v49 = vpop.permute.xlu1 %2441  ;;  %v2431_v50 = vpop.permute.xlu0 %2430 }
 0x34a   :  { %v2448_v51 = vmul.f32 %v2442_v49, %v2007_v47  ;;  %v2438_v52 = vmul.f32 %v2431_v50, %v2006_v48 }
 0x34c   :  { %v2450_v53 = vadd.f32 %v2448_v51, %v2438_v52 }
 0x34d   :  { %v2446_v55 = vpop.permute.xlu1 %2445  ;;  %v2436_v56 = vpop.permute.xlu0 %2435 }
 0x34e   :  { %v2449_v57 = vmul.f32 %v2446_v55, %v2007_v47  ;;  %v2439_v58 = vmul.f32 %v2436_v56, %v2006_v48  ;;  %v2452_v59 = vadd.f32 %v2450_v53, %v2004_v54 }
 0x350   :  { %v2451_v60 = vadd.f32 %v2449_v57, %v2439_v58  ;;  %v2454_v62 = vmax.f32 %v2452_v59, 0.0 }
 0x352   :  { %v2453_v61 = vadd.f32 %v2451_v60, %v2004_v54 }
 0x354   :  { %v2455_v63 = vmax.f32 %v2453_v61, 0.0 }
 0x356   :  { %v2456_v0 = vpack.c.bf16 %v2455_v63, %v2454_v62 }
 0x358   :  { %2951 = vmatmul.mubr.bf16.vlgmr.msra.gmra.mrb[8].mxu0 %v2456_v0 }
 0x37a   :  { %v2409_v1 = vpop.xlane.xlu0 %2408 }
 0x37b   :  { %v2412_v2 = vsub.f32 %v3671_v37, %v2409_v1 }
 0x37d   :  { %v2414_v3 = vmul.f32 1.442695, %v2412_v2 }
 0x37f   :  { %3412 = vpow2.f32 %v2414_v3  ;;  %v2411_v4 = vpop.xlane.xlu1 %2410 }
 0x380   :  { %v2413_v5 = vsub.f32 %v3673_v39, %v2411_v4 }
 0x382   :  { %v2416_v6 = vmul.f32 1.442695, %v2413_v5 }
 0x384   :  { %3414 = vpow2.f32 %v2416_v6 }
 0x385   :  { %3416 = vpow2.f32 %v2391_v13 }
 0x386   :  { %3418 = vpow2.f32 %v2393_v16 }
 0x389   :  { %v3413_v7 = vpop.eup %3412 }
 0x38a   :  { %v2418_v8 = vsel %vm3695_vm3, %v3413_v7, 0.0 }
 0x38b   :  { %2420 = vadd.xlane.f32.xlu0 %v2418_v8 }
 0x38e   :  { %v3415_v9 = vpop.eup %3414 }
 0x38f   :  { %v2419_v10 = vsel %vm3695_vm3, %v3415_v9, 0.0  ;;  %v3417_v20 = vpop.eup %3416 }
 0x390   :  { %2422 = vadd.xlane.f32.xlu0 %v2419_v10  ;;  %v3419_v22 = vpop.eup %3418  ;;  %v2395_v23 = vadd.f32 1.0, %v3417_v20 }
 0x391   :  { %v2396_v24 = vadd.f32 1.0, %v3419_v22 }
 0x418   :  { %v2421_v18 = vpop.xlane.xlu0 %2420 }
 0x419   :  { %3420 = vrcp.f32 %v2421_v18 }
 0x41d   :  { %v2423_v21 = vpop.xlane.xlu0 %2422 }
 0x41e   :  { %3422 = vrcp.f32 %v2423_v21 }
 0x41f   :  { %3424 = vtanh.f32 %v3671_v37 }
 0x420   :  { %3426 = vtanh.f32 %v3673_v39 }
 0x421   :  { %3428 = vrcp.f32 %v2395_v23 }
 0x422   :  { %3430 = vrcp.f32 %v2396_v24 }
 0x423   :  { %v3421_v19 = vpop.eup %3420 }
 0x424   :  { %v2426_v28 = vmul.f32 %v3421_v19, %v2418_v8 }
 0x428   :  { %v3423_v15 = vpop.eup %3422 }
 0x429   :  { %v3425_v27 = vpop.eup %3424  ;;  %v2427_v35 = vmul.f32 %v3423_v15, %v2419_v10 }
 0x42a   :  { %v3427_v30 = vpop.eup %3426 }
 0x42b   :  { %v2555_v14 = vpop.f32.mrb[8].mxu0  ;;  %v3429_v34 = vpop.eup %3428 }
 0x42c   :  { %v2556_v25 = vadd.f32 %v2555_v14, %v2005_v17  ;;  %v2952_v26 = vpop.f32.mrb[9].mxu0  ;;  %v3431_v39 = vpop.eup %3430 }
 0x42d   :  { %v2558_v29 = vpop.f32.mrb[10].mxu0 }
 0x42e   :  { %v2564_v31 = vsel %vm2563_vm4, %v3425_v27, %v2556_v25  ;;  %v2559_v32 = vadd.f32 %v2558_v29, %v2005_v17  ;;  %v2953_v33 = vpop.f32.mrb[11].mxu0 }
 0x42f   :  { %v2566_v36 = vsel %vm2404_vm2, %v2426_v28, %v2564_v31 }
 0x430   :  { %v2568_v37 = vsel %vm2562_vm5, %v3429_v34, %v2566_v36  ;;  %v2565_v38 = vsel %vm2563_vm4, %v3427_v30, %v2559_v32 }
 0x431   :  { %2570 = vst [vmem:[%s3748_s5] sm:$0xff] %v2568_v37  ;;  %v2567_v40 = vsel %vm2404_vm2, %v2427_v35, %v2565_v38 }
 0x432   :  { %v2569_v41 = vsel %vm2562_vm5, %v3431_v39, %v2567_v40 }
 0x433   :  { %2571 = vst [vmem:[%s3748_s5 + $0x8] sm:$0xff] %v2569_v41 }
 0x434   :  { %2576 = vsyncpa [#allocation4], 1 }

</bundles_post_ra>
